<compile_context>
chip_gen: v7x
topology: tpu7x:2x2x1
jax: 0.10.0
libtpu: 0.0.40
codegen_flags: <defaults>
</compile_context>

<pallas_src>
import jax
import jax.numpy as jnp
from jax.experimental import pallas as pl
from jax.experimental.pallas import tpu as pltpu

# Logical layer widths of the MLP and their lane-padded (multiple-of-128) versions.
DIMS = [28 * 28, 512, 256, 128, 64, 32, 10]
PAD_DIMS = [896, 512, 256, 128, 128, 128, 128]
NUM_CLASSES = DIMS[-1]


def _round_up(x, m):
    return ((x + m - 1) // m) * m


def _mlp_kernel(x_ref,
                w1, b1, w2, b2, w3, b3, w4, b4, w5, b5, w6, b6,
                o_ref):
    """Fused 6-layer MLP over one (TB, 896) batch tile. Weights stay resident.

    All matmuls run natively in bf16 on the MXU; accumulation / bias / ReLU in f32.
    """

    def linear(h_bf16, w_ref, b_ref):
        # bf16 x bf16 -> f32 accumulation on the MXU.
        return jnp.dot(h_bf16, w_ref[...],
                       preferred_element_type=jnp.float32) + b_ref[...]

    def relu_bf16(h_f32):
        return jnp.maximum(h_f32, 0.0).astype(jnp.bfloat16)

    h = x_ref[...].astype(jnp.bfloat16)          # no-op if input already bf16
    h = relu_bf16(linear(h, w1, b1))             # fc1 + ReLU  (dropout = identity)
    h = relu_bf16(linear(h, w2, b2))             # fc2 + ReLU
    h = relu_bf16(linear(h, w3, b3))             # fc3 + ReLU
    h = relu_bf16(linear(h, w4, b4))             # fc4 + ReLU (padded 64 -> 128)
    h = relu_bf16(linear(h, w5, b5))             # fc5 + ReLU (padded 32 -> 128)
    o_ref[...] = linear(h, w6, b6)               # fc6 logits, f32 (padded 10 -> 128)


def init_params(key):
    """Deterministic init mirroring nn.Linear's default U(-1/sqrt(fan_in), +).

    Weights are stored (in, out) — transposed vs. torch's (out, in) — so the
    kernel computes h @ W + b.
    """
    params = []
    for i in range(len(DIMS) - 1):
        fan_in, fan_out = DIMS[i], DIMS[i + 1]
        key, kw, kb = jax.random.split(key, 3)
        bound = 1.0 / jnp.sqrt(jnp.float32(fan_in))
        w = jax.random.uniform(kw, (fan_in, fan_out), jnp.float32, -bound, bound)
        b = jax.random.uniform(kb, (1, fan_out), jnp.float32, -bound, bound)
        params.append((w, b))
    return params


def prepare_params(params):
    """One-time prep: zero-pad every layer to lane-aligned widths, cast W to bf16."""
    prepared = []
    for i, (w, b) in enumerate(params):
        kin, kout = PAD_DIMS[i], PAD_DIMS[i + 1]
        w = jnp.pad(w, ((0, kin - w.shape[0]), (0, kout - w.shape[1])))
        b = jnp.pad(b, ((0, 0), (0, kout - b.shape[1])))
        prepared.append((w.astype(jnp.bfloat16), b.astype(jnp.float32)))
    return prepared


def _choose_tile(B, tb):
    """Pick a batch tile TB (multiple of 8) and padded batch B_pad.

    Guarantees >=2 grid steps whenever the batch has >=16 rows, so the
    'parallel' axis can split across v7x's two TensorCores.
    """
    rows = _round_up(B, 8)
    TB = min(tb, rows)
    if rows >= 16 and TB >= rows:          # would otherwise be a single grid step
        TB = _round_up((rows + 1) // 2, 8)
    B_pad = _round_up(rows, TB)
    return TB, B_pad


def mnist_classifier_forward(x, prepared_params, *, tb=1024):
    """x: (B, 1, 28, 28) in any float/int dtype (anything flattening to (B, 784))."""
    B = x.shape[0]
    # Cast to bf16 *before* padding: the wrapper-side fusion then writes a single
    # bf16 padded copy (half the HBM traffic of the old f32 padded copy).
    x2d = x.reshape(B, DIMS[0]).astype(jnp.bfloat16)

    TB, B_pad = _choose_tile(B, tb)

    # Pad batch to a tile multiple and K 784 -> 896 (zero rows of w1 make it a no-op).
    x2d = jnp.pad(x2d, ((0, B_pad - B), (0, PAD_DIMS[0] - DIMS[0])))

    flat_args = [x2d]
    in_specs = [pl.BlockSpec((TB, PAD_DIMS[0]), lambda i: (i, 0))]
    for (w, b) in prepared_params:
        flat_args += [w, b]
        # Constant block index -> weights/biases stay resident in VMEM across steps.
        in_specs += [pl.BlockSpec(w.shape, lambda i: (0, 0)),
                     pl.BlockSpec(b.shape, lambda i: (0, 0))]

    flops = 2 * B_pad * sum(PAD_DIMS[i] * PAD_DIMS[i + 1] for i in range(6))
    bytes_accessed = (x2d.size * x2d.dtype.itemsize
                      + sum(w.size * w.dtype.itemsize + b.size * b.dtype.itemsize
                            for w, b in prepared_params)
                      + B_pad * PAD_DIMS[-1] * 4)

    out = pl.pallas_call(
        _mlp_kernel,
        out_shape=jax.ShapeDtypeStruct((B_pad, PAD_DIMS[-1]), jnp.float32),
        grid=(B_pad // TB,),
        in_specs=in_specs,
        out_specs=pl.BlockSpec((TB, PAD_DIMS[-1]), lambda i: (i, 0)),
        compiler_params=pltpu.CompilerParams(
            dimension_semantics=("parallel",),     # split batch across TCs (v7x)
            vmem_limit_bytes=32 << 20,             # plenty even at TB=1024
        ),
        cost_estimate=pl.CostEstimate(flops=flops, transcendentals=0,
                                      bytes_accessed=bytes_accessed),
    )(*flat_args)

    return out[:B, :NUM_CLASSES]


def reference_forward(x, params):
    """Pure-JAX reference mirroring the kernel's bf16-weight/bf16-activation,
    f32-accumulation arithmetic."""
    h = x.reshape(x.shape[0], DIMS[0]).astype(jnp.bfloat16)
    for i, (w, b) in enumerate(params):
        wq = w.astype(jnp.bfloat16)
        h = jnp.dot(h, wq, preferred_element_type=jnp.float32) + b
        if i < len(params) - 1:
            h = jnp.maximum(h, 0.0).astype(jnp.bfloat16)
    return h


if __name__ == "__main__":
    key = jax.random.PRNGKey(0)
    key, kx = jax.random.split(key)

    B = 8
    x = jax.random.normal(kx, (B, 1, 28, 28), jnp.float32)   # MNIST-like NCHW input
    params = init_params(key)
    prepared = prepare_params(params)                         # one-time weight prep

    out = mnist_classifier_forward(x, prepared)
    out = jax.block_until_ready(out)

    ref = reference_forward(x, params)
    assert out.shape == (B, NUM_CLASSES), out.shape
    assert jnp.allclose(out, ref, atol=1e-2, rtol=1e-2), "mismatch vs reference"

    print("KERNEL_OK")
</pallas_src>

<mosaic_0001>
module attributes {stable_mosaic.version = 11 : i64} {
  func.func @_mlp_kernel(%arg0: i32, %arg1: memref<8x896xbf16, #tpu.memory_space<vmem>>, %arg2: memref<896x512xbf16, #tpu.memory_space<vmem>>, %arg3: memref<1x512xf32, #tpu.memory_space<vmem>>, %arg4: memref<512x256xbf16, #tpu.memory_space<vmem>>, %arg5: memref<1x256xf32, #tpu.memory_space<vmem>>, %arg6: memref<256x128xbf16, #tpu.memory_space<vmem>>, %arg7: memref<1x128xf32, #tpu.memory_space<vmem>>, %arg8: memref<128x128xbf16, #tpu.memory_space<vmem>>, %arg9: memref<1x128xf32, #tpu.memory_space<vmem>>, %arg10: memref<128x128xbf16, #tpu.memory_space<vmem>>, %arg11: memref<1x128xf32, #tpu.memory_space<vmem>>, %arg12: memref<128x128xbf16, #tpu.memory_space<vmem>>, %arg13: memref<1x128xf32, #tpu.memory_space<vmem>>, %arg14: memref<8x128xf32, #tpu.memory_space<vmem>>) attributes {dimension_semantics = [#tpu.dimension_semantics<parallel>], iteration_bounds = array<i64: 1>, scalar_prefetch = 0 : i64, scratch_operands = 0 : i64, tpu.core_type = #tpu.core_type<tc>, window_params = [{transform_indices = @transform_0, window_bounds = array<i64: 8, 896>}, {pipeline_mode = #tpu.pipeline_mode<synchronous>, transform_indices = @transform_1, window_bounds = array<i64: 896, 512>}, {pipeline_mode = #tpu.pipeline_mode<synchronous>, transform_indices = @transform_2, window_bounds = array<i64: 1, 512>}, {pipeline_mode = #tpu.pipeline_mode<synchronous>, transform_indices = @transform_3, window_bounds = array<i64: 512, 256>}, {pipeline_mode = #tpu.pipeline_mode<synchronous>, transform_indices = @transform_4, window_bounds = array<i64: 1, 256>}, {pipeline_mode = #tpu.pipeline_mode<synchronous>, transform_indices = @transform_5, window_bounds = array<i64: 256, 128>}, {pipeline_mode = #tpu.pipeline_mode<synchronous>, transform_indices = @transform_6, window_bounds = array<i64: 1, 128>}, {pipeline_mode = #tpu.pipeline_mode<synchronous>, transform_indices = @transform_7, window_bounds = array<i64: 128, 128>}, {pipeline_mode = #tpu.pipeline_mode<synchronous>, transform_indices = @transform_8, window_bounds = array<i64: 1, 128>}, {pipeline_mode = #tpu.pipeline_mode<synchronous>, transform_indices = @transform_9, window_bounds = array<i64: 128, 128>}, {pipeline_mode = #tpu.pipeline_mode<synchronous>, transform_indices = @transform_10, window_bounds = array<i64: 1, 128>}, {pipeline_mode = #tpu.pipeline_mode<synchronous>, transform_indices = @transform_11, window_bounds = array<i64: 128, 128>}, {pipeline_mode = #tpu.pipeline_mode<synchronous>, transform_indices = @transform_12, window_bounds = array<i64: 1, 128>}, {transform_indices = @transform_13, window_bounds = array<i64: 8, 128>}]} {
    %c0 = arith.constant 0 : index
    %c0_0 = arith.constant 0 : index
    %0 = vector.load %arg1[%c0, %c0_0] : memref<8x896xbf16, #tpu.memory_space<vmem>>, vector<8x896xbf16>
    %c0_1 = arith.constant 0 : index
    %c0_2 = arith.constant 0 : index
    %1 = vector.load %arg2[%c0_1, %c0_2] : memref<896x512xbf16, #tpu.memory_space<vmem>>, vector<896x512xbf16>
    %cst = arith.constant dense<0.000000e+00> : vector<8x512xf32>
    %2 = tpu.matmul %0, %1, %cst {dimension_numbers = #tpu.dot_dimension_numbers<[1], [0], [0], [1], [0, 0, 1, 1], [], []>} : vector<8x896xbf16>, vector<896x512xbf16>, vector<8x512xf32> -> vector<8x512xf32>
    %c0_3 = arith.constant 0 : index
    %c0_4 = arith.constant 0 : index
    %3 = vector.load %arg3[%c0_3, %c0_4] : memref<1x512xf32, #tpu.memory_space<vmem>>, vector<1x512xf32>
    %4 = vector.broadcast %3 : vector<1x512xf32> to vector<8x512xf32>
    %5 = arith.addf %2, %4 : vector<8x512xf32>
    %cst_5 = arith.constant 0.000000e+00 : f32
    %6 = vector.broadcast %cst_5 : f32 to vector<8x512xf32>
    %7 = arith.maximumf %5, %6 : vector<8x512xf32>
    %8 = arith.truncf %7 : vector<8x512xf32> to vector<8x512xbf16>
    %c0_6 = arith.constant 0 : index
    %c0_7 = arith.constant 0 : index
    %9 = vector.load %arg4[%c0_6, %c0_7] : memref<512x256xbf16, #tpu.memory_space<vmem>>, vector<512x256xbf16>
    %cst_8 = arith.constant dense<0.000000e+00> : vector<8x256xf32>
    %10 = tpu.matmul %8, %9, %cst_8 {dimension_numbers = #tpu.dot_dimension_numbers<[1], [0], [0], [1], [0, 0, 1, 1], [], []>} : vector<8x512xbf16>, vector<512x256xbf16>, vector<8x256xf32> -> vector<8x256xf32>
    %c0_9 = arith.constant 0 : index
    %c0_10 = arith.constant 0 : index
    %11 = vector.load %arg5[%c0_9, %c0_10] : memref<1x256xf32, #tpu.memory_space<vmem>>, vector<1x256xf32>
    %12 = vector.broadcast %11 : vector<1x256xf32> to vector<8x256xf32>
    %13 = arith.addf %10, %12 : vector<8x256xf32>
    %cst_11 = arith.constant 0.000000e+00 : f32
    %14 = vector.broadcast %cst_11 : f32 to vector<8x256xf32>
    %15 = arith.maximumf %13, %14 : vector<8x256xf32>
    %16 = arith.truncf %15 : vector<8x256xf32> to vector<8x256xbf16>
    %c0_12 = arith.constant 0 : index
    %c0_13 = arith.constant 0 : index
    %17 = vector.load %arg6[%c0_12, %c0_13] : memref<256x128xbf16, #tpu.memory_space<vmem>>, vector<256x128xbf16>
    %cst_14 = arith.constant dense<0.000000e+00> : vector<8x128xf32>
    %18 = tpu.matmul %16, %17, %cst_14 {dimension_numbers = #tpu.dot_dimension_numbers<[1], [0], [0], [1], [0, 0, 1, 1], [], []>} : vector<8x256xbf16>, vector<256x128xbf16>, vector<8x128xf32> -> vector<8x128xf32>
    %c0_15 = arith.constant 0 : index
    %c0_16 = arith.constant 0 : index
    %19 = vector.load %arg7[%c0_15, %c0_16] : memref<1x128xf32, #tpu.memory_space<vmem>>, vector<1x128xf32>
    %20 = vector.broadcast %19 : vector<1x128xf32> to vector<8x128xf32>
    %21 = arith.addf %18, %20 : vector<8x128xf32>
    %cst_17 = arith.constant 0.000000e+00 : f32
    %22 = vector.broadcast %cst_17 : f32 to vector<8x128xf32>
    %23 = arith.maximumf %21, %22 : vector<8x128xf32>
    %24 = arith.truncf %23 : vector<8x128xf32> to vector<8x128xbf16>
    %c0_18 = arith.constant 0 : index
    %c0_19 = arith.constant 0 : index
    %25 = vector.load %arg8[%c0_18, %c0_19] : memref<128x128xbf16, #tpu.memory_space<vmem>>, vector<128x128xbf16>
    %cst_20 = arith.constant dense<0.000000e+00> : vector<8x128xf32>
    %26 = tpu.matmul %24, %25, %cst_20 {dimension_numbers = #tpu.dot_dimension_numbers<[1], [0], [0], [1], [0, 0, 1, 1], [], []>} : vector<8x128xbf16>, vector<128x128xbf16>, vector<8x128xf32> -> vector<8x128xf32>
    %c0_21 = arith.constant 0 : index
    %c0_22 = arith.constant 0 : index
    %27 = vector.load %arg9[%c0_21, %c0_22] : memref<1x128xf32, #tpu.memory_space<vmem>>, vector<1x128xf32>
    %28 = vector.broadcast %27 : vector<1x128xf32> to vector<8x128xf32>
    %29 = arith.addf %26, %28 : vector<8x128xf32>
    %cst_23 = arith.constant 0.000000e+00 : f32
    %30 = vector.broadcast %cst_23 : f32 to vector<8x128xf32>
    %31 = arith.maximumf %29, %30 : vector<8x128xf32>
    %32 = arith.truncf %31 : vector<8x128xf32> to vector<8x128xbf16>
    %c0_24 = arith.constant 0 : index
    %c0_25 = arith.constant 0 : index
    %33 = vector.load %arg10[%c0_24, %c0_25] : memref<128x128xbf16, #tpu.memory_space<vmem>>, vector<128x128xbf16>
    %cst_26 = arith.constant dense<0.000000e+00> : vector<8x128xf32>
    %34 = tpu.matmul %32, %33, %cst_26 {dimension_numbers = #tpu.dot_dimension_numbers<[1], [0], [0], [1], [0, 0, 1, 1], [], []>} : vector<8x128xbf16>, vector<128x128xbf16>, vector<8x128xf32> -> vector<8x128xf32>
    %c0_27 = arith.constant 0 : index
    %c0_28 = arith.constant 0 : index
    %35 = vector.load %arg11[%c0_27, %c0_28] : memref<1x128xf32, #tpu.memory_space<vmem>>, vector<1x128xf32>
    %36 = vector.broadcast %35 : vector<1x128xf32> to vector<8x128xf32>
    %37 = arith.addf %34, %36 : vector<8x128xf32>
    %cst_29 = arith.constant 0.000000e+00 : f32
    %38 = vector.broadcast %cst_29 : f32 to vector<8x128xf32>
    %39 = arith.maximumf %37, %38 : vector<8x128xf32>
    %40 = arith.truncf %39 : vector<8x128xf32> to vector<8x128xbf16>
    %c0_30 = arith.constant 0 : index
    %c0_31 = arith.constant 0 : index
    %41 = vector.load %arg12[%c0_30, %c0_31] : memref<128x128xbf16, #tpu.memory_space<vmem>>, vector<128x128xbf16>
    %cst_32 = arith.constant dense<0.000000e+00> : vector<8x128xf32>
    %42 = tpu.matmul %40, %41, %cst_32 {dimension_numbers = #tpu.dot_dimension_numbers<[1], [0], [0], [1], [0, 0, 1, 1], [], []>} : vector<8x128xbf16>, vector<128x128xbf16>, vector<8x128xf32> -> vector<8x128xf32>
    %c0_33 = arith.constant 0 : index
    %c0_34 = arith.constant 0 : index
    %43 = vector.load %arg13[%c0_33, %c0_34] : memref<1x128xf32, #tpu.memory_space<vmem>>, vector<1x128xf32>
    %44 = vector.broadcast %43 : vector<1x128xf32> to vector<8x128xf32>
    %45 = arith.addf %42, %44 : vector<8x128xf32>
    %c0_35 = arith.constant 0 : index
    %c0_36 = arith.constant 0 : index
    %46 = vector.load %arg14[%c0_35, %c0_36] : memref<8x128xf32, #tpu.memory_space<vmem>>, vector<8x128xf32>
    tpu.vector_store %arg14[%c0_35, %c0_36], %45 {strides = array<i32>} : memref<8x128xf32, #tpu.memory_space<vmem>>, vector<8x128xf32>,
    return
  }
  func.func @transform_0(%arg0: i32) -> (i32, i32) {
    %c0_i32 = arith.constant 0 : i32
    %c0_i32_0 = arith.constant 0 : i32
    return %arg0, %c0_i32 : i32, i32
  }
  func.func @transform_1(%arg0: i32) -> (i32, i32) {
    %c0_i32 = arith.constant 0 : i32
    %c0_i32_0 = arith.constant 0 : i32
    %c0_i32_1 = arith.constant 0 : i32
    return %c0_i32, %c0_i32_0 : i32, i32
  }
  func.func @transform_2(%arg0: i32) -> (i32, i32) {
    %c0_i32 = arith.constant 0 : i32
    %c0_i32_0 = arith.constant 0 : i32
    %c0_i32_1 = arith.constant 0 : i32
    return %c0_i32, %c0_i32_0 : i32, i32
  }
  func.func @transform_3(%arg0: i32) -> (i32, i32) {
    %c0_i32 = arith.constant 0 : i32
    %c0_i32_0 = arith.constant 0 : i32
    %c0_i32_1 = arith.constant 0 : i32
    return %c0_i32, %c0_i32_0 : i32, i32
  }
  func.func @transform_4(%arg0: i32) -> (i32, i32) {
    %c0_i32 = arith.constant 0 : i32
    %c0_i32_0 = arith.constant 0 : i32
    %c0_i32_1 = arith.constant 0 : i32
    return %c0_i32, %c0_i32_0 : i32, i32
  }
  func.func @transform_5(%arg0: i32) -> (i32, i32) {
    %c0_i32 = arith.constant 0 : i32
    %c0_i32_0 = arith.constant 0 : i32
    %c0_i32_1 = arith.constant 0 : i32
    return %c0_i32, %c0_i32_0 : i32, i32
  }
  func.func @transform_6(%arg0: i32) -> (i32, i32) {
    %c0_i32 = arith.constant 0 : i32
    %c0_i32_0 = arith.constant 0 : i32
    %c0_i32_1 = arith.constant 0 : i32
    return %c0_i32, %c0_i32_0 : i32, i32
  }
  func.func @transform_7(%arg0: i32) -> (i32, i32) {
    %c0_i32 = arith.constant 0 : i32
    %c0_i32_0 = arith.constant 0 : i32
    %c0_i32_1 = arith.constant 0 : i32
    return %c0_i32, %c0_i32_0 : i32, i32
  }
  func.func @transform_8(%arg0: i32) -> (i32, i32) {
    %c0_i32 = arith.constant 0 : i32
    %c0_i32_0 = arith.constant 0 : i32
    %c0_i32_1 = arith.constant 0 : i32
    return %c0_i32, %c0_i32_0 : i32, i32
  }
  func.func @transform_9(%arg0: i32) -> (i32, i32) {
    %c0_i32 = arith.constant 0 : i32
    %c0_i32_0 = arith.constant 0 : i32
    %c0_i32_1 = arith.constant 0 : i32
    return %c0_i32, %c0_i32_0 : i32, i32
  }
  func.func @transform_10(%arg0: i32) -> (i32, i32) {
    %c0_i32 = arith.constant 0 : i32
    %c0_i32_0 = arith.constant 0 : i32
    %c0_i32_1 = arith.constant 0 : i32
    return %c0_i32, %c0_i32_0 : i32, i32
  }
  func.func @transform_11(%arg0: i32) -> (i32, i32) {
    %c0_i32 = arith.constant 0 : i32
    %c0_i32_0 = arith.constant 0 : i32
    %c0_i32_1 = arith.constant 0 : i32
    return %c0_i32, %c0_i32_0 : i32, i32
  }
  func.func @transform_12(%arg0: i32) -> (i32, i32) {
    %c0_i32 = arith.constant 0 : i32
    %c0_i32_0 = arith.constant 0 : i32
    %c0_i32_1 = arith.constant 0 : i32
    return %c0_i32, %c0_i32_0 : i32, i32
  }
  func.func @transform_13(%arg0: i32) -> (i32, i32) {
    %c0_i32 = arith.constant 0 : i32
    %c0_i32_0 = arith.constant 0 : i32
    return %arg0, %c0_i32 : i32, i32
  }
}

</mosaic_0001>

<bundles_post_ra>
// kernel: tpu_custom_call.1
= control target key start
LH: loop header
LB: loop body
LE: loop exit
PB: predicated region body
PF: predicated region fallthrough
CT: control target
= control target key end

     0   :  { %18 = vsyncpa [#allocation3], 0  ;;  %s4327_s0 = inlined_call_operand.hbm [shape: bf16[8,896], index: 0, kind: input, shape index: {}]   ;;  %s4328_s1 = inlined_call_operand.hbm [shape: bf16[896,512], index: 1, kind: input, shape index: {}]   ;;  %s4329_s2 = inlined_call_operand.vmem [shape: f32[1,512], index: 2, kind: input, shape index: {}]   ;;  %s4330_s3 = inlined_call_operand.hbm [shape: bf16[512,256], index: 3, kind: input, shape index: {}]   ;;  %s4331_s4 = inlined_call_operand.vmem [shape: f32[1,256], index: 4, kind: input, shape index: {}]   ;;  %s4332_s5 = inlined_call_operand.hbm [shape: bf16[256,128], index: 5, kind: input, shape index: {}]   ;;  %s4333_s6 = inlined_call_operand.vmem [shape: f32[1,128], index: 6, kind: input, shape index: {}]   ;;  %s4334_s7 = inlined_call_operand.hbm [shape: bf16[128,128], index: 7, kind: input, shape index: {}]   ;;  %s4335_s8 = inlined_call_operand.vmem [shape: f32[1,128], index: 8, kind: input, shape index: {}]   ;;  %s4336_s9 = inlined_call_operand.hbm [shape: bf16[128,128], index: 9, kind: input, shape index: {}]   ;;  %s4337_s10 = inlined_call_operand.vmem [shape: f32[1,128], index: 10, kind: input, shape index: {}]   ;;  %s4338_s11 = inlined_call_operand.hbm [shape: bf16[128,128], index: 11, kind: input, shape index: {}]   ;;  %s4339_s12 = inlined_call_operand.vmem [shape: f32[1,128], index: 12, kind: input, shape index: {}]   ;;  %s4340_s13 = inlined_call_operand.hbm [shape: f32[8,128], index: 13, kind: output, shape index: {}]  }
   0x1   :  { %19 = vsyncpa [#allocation6], 0 }
   0x2   :  { %20 = vsyncpa [#allocation9], 0 }
   0x3   :  { %21 = vsyncpa [#allocation12], 0 }
   0x4   :  { %22 = vsyncpa [#allocation4], 0  ;;  %s4049_s25 = smov [#allocation5]   ;;  %s3863_s29 = scalar_lea.hbm %s4328_s1, 28672 }
   0x5   :  { %s38_s26 = sshll.u32 %s4049_s25, 4  ;;  %p3864_p0 = scmp.ne.s32.totalorder %s4328_s1, %s3863_s29  ;;  %s39_s26 = int_to_ptr.vmem [resolvable:$true] %s38_s26 }
   0x6   :  { %p3867_p1 = scmp.lt.u32.totalorder %s3863_s29, %s4328_s1 }
   0x8   :  { %p3869_p2 = pnand %p3867_p1, %p3864_p0 }
   0xa   :  { %3872 = shalt.err (!%p3869_p2)
}
   0xb   :  { %s3873_s17 = scalar_lea.vmem %s39_s26, 28672  ;;  %p3878_p4 = scmp.lt.s32.totalorder %s39_s26, %s39_s26 }
   0xc   :  { %p3874_p3 = scmp.ne.s32.totalorder %s39_s26, %s3873_s17  ;;  %p3879_p5 = scmp.lt.s32.totalorder %s3873_s17, %s3873_s17 }
   0xe   :  { %p3880_p6 = por %p3879_p5, %p3878_p4 }
  0x10   :  { %p3881_p7 = pnand %p3880_p6, %p3874_p3 }
  0x12   :  { %3884 = shalt.err (!%p3881_p7)
}
  0x13   :  { %s4050_s18 = smov 256   ;;  %s4051_s19 = smov 16  }
  0x14   :  { %44 = dma.hbm_to_vmem [thread:$0]  %s4328_s1, 28672, %s39_s26, [#allocation6], %s4050_s18, %s4050_s18, %s4051_s19  }
  0x15   :  { %s4052_s22 = smov [#allocation8]   ;;  %s3885_s27 = scalar_lea.hbm %s4332_s5, 2048 }
  0x16   :  { %s66_s23 = sshll.u32 %s4052_s22, 4  ;;  %p3886_p8 = scmp.ne.s32.totalorder %s4332_s5, %s3885_s27  ;;  %s67_s23 = int_to_ptr.vmem [resolvable:$true] %s66_s23 }
  0x17   :  { %p3889_p9 = scmp.lt.u32.totalorder %s3885_s27, %s4332_s5 }
  0x19   :  { %p3891_p10 = pnand %p3889_p9, %p3886_p8 }
  0x1b   :  { %3894 = shalt.err (!%p3891_p10)
}
  0x1c   :  { %s3895_s15 = scalar_lea.vmem %s67_s23, 2048  ;;  %p3900_p12 = scmp.lt.s32.totalorder %s67_s23, %s67_s23 }
  0x1d   :  { %p3896_p11 = scmp.ne.s32.totalorder %s67_s23, %s3895_s15  ;;  %p3901_p13 = scmp.lt.s32.totalorder %s3895_s15, %s3895_s15 }
  0x1f   :  { %p3902_p0 = por %p3901_p13, %p3900_p12 }
  0x21   :  { %p3903_p1 = pnand %p3902_p0, %p3896_p11 }
  0x23   :  { %3906 = shalt.err (!%p3903_p1)
}
  0x24   :  { %s4053_s1 = smov 64   ;;  %s4054_s26 = smov 4  }
  0x25   :  { %72 = dma.hbm_to_vmem [thread:$0]  %s4332_s5, 2048, %s67_s23, [#allocation9], %s4053_s1, %s4053_s1, %s4054_s26  }
  0x26   :  { %s4055_s18 = smov [#allocation11]   ;;  %s4056_s20 = smov [#allocation2]  }
  0x27   :  { %s94_s19 = sshll.u32 %s4055_s18, 4  ;;  %s29_s21 = sshll.u32 %s4056_s20, 4  ;;  %s95_s19 = int_to_ptr.vmem [resolvable:$true] %s94_s19  ;;  %s30_s21 = int_to_ptr.vmem [resolvable:$true] %s29_s21 }
  0x28   :  { %s3907_s25 = scalar_lea.hbm %s4336_s9, 1024 }
  0x29   :  { %p3908_p2 = scmp.ne.s32.totalorder %s4336_s9, %s3907_s25  ;;  %p3911_p3 = scmp.lt.u32.totalorder %s3907_s25, %s4336_s9 }
  0x2b   :  { %p3913_p4 = pnand %p3911_p3, %p3908_p2 }
  0x2d   :  { %3916 = shalt.err (!%p3913_p4)
}
  0x2e   :  { %s3917_s5 = scalar_lea.vmem %s95_s19, 1024  ;;  %p3922_p6 = scmp.lt.s32.totalorder %s95_s19, %s95_s19 }
  0x2f   :  { %p3918_p5 = scmp.ne.s32.totalorder %s95_s19, %s3917_s5  ;;  %p3923_p7 = scmp.lt.s32.totalorder %s3917_s5, %s3917_s5 }
  0x31   :  { %p3924_p8 = por %p3923_p7, %p3922_p6 }
  0x33   :  { %p3925_p9 = pnand %p3924_p8, %p3918_p5 }
  0x35   :  { %3928 = shalt.err (!%p3925_p9)
}
  0x36   :  { %100 = dma.hbm_to_vmem [thread:$0]  %s4336_s9, 1024, %s95_s19, [#allocation12], %s4053_s1, %s4053_s1, %s4054_s26  }
  0x37   :  { %s3929_s17 = scalar_lea.hbm %s4327_s0, 448 }
  0x38   :  { %p3930_p10 = scmp.ne.s32.totalorder %s4327_s0, %s3929_s17  ;;  %p3933_p11 = scmp.lt.u32.totalorder %s3929_s17, %s4327_s0 }
  0x3a   :  { %p3935_p12 = pnand %p3933_p11, %p3930_p10 }
  0x3c   :  { %3938 = shalt.err (!%p3935_p12)
}
  0x3d   :  { %s3939_s25 = scalar_lea.vmem %s30_s21, 448  ;;  %p3944_p0 = scmp.lt.s32.totalorder %s30_s21, %s30_s21 }
  0x3e   :  { %p3940_p13 = scmp.ne.s32.totalorder %s30_s21, %s3939_s25  ;;  %p3945_p1 = scmp.lt.s32.totalorder %s3939_s25, %s3939_s25 }
  0x40   :  { %p3946_p2 = por %p3945_p1, %p3944_p0 }
  0x42   :  { %p3947_p3 = pnand %p3946_p2, %p3940_p13 }
  0x44   :  { %3950 = shalt.err (!%p3947_p3)
}
  0x45   :  { %32 = dma.hbm_to_vmem [thread:$0]  %s4327_s0, 448, %s30_s21, [#allocation3]  }
  0x46   :  { %s4057_s27 = smov [#allocation7]   ;;  %s3951_s5 = scalar_lea.hbm %s4330_s3, 8192 }
  0x47   :  { %s52_s28 = sshll.u32 %s4057_s27, 4  ;;  %p3952_p4 = scmp.ne.s32.totalorder %s4330_s3, %s3951_s5  ;;  %s53_s28 = int_to_ptr.vmem [resolvable:$true] %s52_s28 }
  0x48   :  { %p3955_p5 = scmp.lt.u32.totalorder %s3951_s5, %s4330_s3 }
  0x4a   :  { %p3957_p6 = pnand %p3955_p5, %p3952_p4 }
  0x4c   :  { %3960 = shalt.err (!%p3957_p6)
}
  0x4d   :  { %s3961_s17 = scalar_lea.vmem %s53_s28, 8192  ;;  %p3966_p8 = scmp.lt.s32.totalorder %s53_s28, %s53_s28 }
  0x4e   :  { %p3962_p7 = scmp.ne.s32.totalorder %s53_s28, %s3961_s17  ;;  %p3967_p9 = scmp.lt.s32.totalorder %s3961_s17, %s3961_s17 }
  0x50   :  { %p3968_p10 = por %p3967_p9, %p3966_p8 }
  0x52   :  { %p3969_p11 = pnand %p3968_p10, %p3962_p7 }
  0x54   :  { %3972 = shalt.err (!%p3969_p11)
}
  0x55   :  { %s4058_s0 = smov 128   ;;  %s4059_s21 = smov 8  }
  0x56   :  { %58 = dma.hbm_to_vmem [thread:$0]  %s4330_s3, 8192, %s53_s28, [#allocation6], %s4058_s0, %s4058_s0, %s4059_s21  }
  0x57   :  { %s4060_s22 = smov [#allocation10]   ;;  %s4061_s25 = smov [#allocation13]  }
  0x58   :  { %s80_s24 = sshll.u32 %s4060_s22, 4  ;;  %s108_s9 = sshll.u32 %s4061_s25, 4  ;;  %s81_s24 = int_to_ptr.vmem [resolvable:$true] %s80_s24  ;;  %s109_s9 = int_to_ptr.vmem [resolvable:$true] %s108_s9 }
  0x59   :  { %s3973_s29 = scalar_lea.hbm %s4334_s7, 1024 }
  0x5a   :  { %p3974_p12 = scmp.ne.s32.totalorder %s4334_s7, %s3973_s29  ;;  %p3977_p13 = scmp.lt.u32.totalorder %s3973_s29, %s4334_s7 }
  0x5c   :  { %p3979_p0 = pnand %p3977_p13, %p3974_p12 }
  0x5e   :  { %3982 = shalt.err (!%p3979_p0)
}
  0x5f   :  { %s3983_s3 = scalar_lea.vmem %s81_s24, 1024  ;;  %p3988_p2 = scmp.lt.s32.totalorder %s81_s24, %s81_s24 }
  0x60   :  { %p3984_p1 = scmp.ne.s32.totalorder %s81_s24, %s3983_s3  ;;  %p3989_p3 = scmp.lt.s32.totalorder %s3983_s3, %s3983_s3 }
  0x62   :  { %p3990_p4 = por %p3989_p3, %p3988_p2 }
  0x64   :  { %p3991_p5 = pnand %p3990_p4, %p3984_p1 }
  0x66   :  { %3994 = shalt.err (!%p3991_p5)
}
  0x67   :  { %86 = dma.hbm_to_vmem [thread:$0]  %s4334_s7, 1024, %s81_s24, [#allocation9], %s4053_s1, %s4053_s1, %s4054_s26  }
  0x68   :  { %s3995_s0 = scalar_lea.hbm %s4338_s11, 1024 }
  0x69   :  { %p3996_p6 = scmp.ne.s32.totalorder %s4338_s11, %s3995_s0  ;;  %p3999_p7 = scmp.lt.u32.totalorder %s3995_s0, %s4338_s11 }
  0x6b   :  { %p4001_p8 = pnand %p3999_p7, %p3996_p6 }
  0x6d   :  { %4004 = shalt.err (!%p4001_p8)
}
  0x6e   :  { %s4005_s25 = scalar_lea.vmem %s109_s9, 1024  ;;  %p4010_p10 = scmp.lt.s32.totalorder %s109_s9, %s109_s9 }
  0x6f   :  { %p4006_p9 = scmp.ne.s32.totalorder %s109_s9, %s4005_s25  ;;  %p4011_p11 = scmp.lt.s32.totalorder %s4005_s25, %s4005_s25 }
  0x71   :  { %p4012_p12 = por %p4011_p11, %p4010_p10 }
  0x73   :  { %p4013_p13 = pnand %p4012_p12, %p4006_p9 }
  0x75   :  { %4016 = shalt.err (!%p4013_p13)
}
  0x76   :  { %114 = dma.hbm_to_vmem [thread:$0]  %s4338_s11, 1024, %s109_s9, [#allocation12], %s4053_s1, %s4053_s1, %s4054_s26  }
  0x77   :  { %4039 = dma.done.wait [#allocation3], 448  }
  0x78   :  { %4040 = vsyncadd [#allocation3], 4294966848 }
  0x79   :  { %4041 = dma.done.wait [#allocation6], 36864  }
  0x7a   :  { %4042 = vsyncadd [#allocation6], 4294930432 }
  0x7b   :  { %4043 = dma.done.wait [#allocation9], 3072  }
  0x7c   :  { %4044 = vsyncadd [#allocation9], 4294964224 }
  0x7d   :  { %4045 = dma.done.wait [#allocation12], 2048  }
  0x7e   :  { %4046 = vsyncadd [#allocation12], 4294965248  ;;  %v3384_v0 = vld [vmem:[#allocation5 + $0x4] ss:$16 sps:$4 sm:$0xff]   ;;  %v3386_v1 = vld [vmem:[#allocation5 + $0xc] ss:$16 sps:$4 sm:$0xff]  }
  0x7f   :  { %1534 = vmatprep.subr.bf16.mxu0 %v3384_v0  ;;  %v3388_v2 = vld [vmem:[#allocation5] ss:$16 sps:$4 sm:$0xff]   ;;  %v3389_v3 = vld [vmem:[#allocation5 + $0x8] ss:$16 sps:$4 sm:$0xff]   ;;  %1698 = vmatprep.subr.bf16.mxu1 %v3386_v1  ;;  %v3390_v4 = vld [vmem:[#allocation5 + $0x24] ss:$16 sps:$4 sm:$0xff]  }
  0x80   :  { %1535 = vmatpush1.bf16.msra.mxu0 %v3388_v2  ;;  %1699 = vmatpush1.bf16.msra.mxu1 %v3389_v3  ;;  %v3392_v5 = vld [vmem:[#allocation5 + $0x2c] ss:$16 sps:$4 sm:$0xff]   ;;  %v3394_v6 = vld [vmem:[#allocation5 + $0x20] ss:$16 sps:$4 sm:$0xff]   ;;  %v3395_v7 = vld [vmem:[#allocation5 + $0x28] ss:$16 sps:$4 sm:$0xff]  }
  0x81   :  { %1536 = vmatprep.subr.bf16.mxu0 %v3390_v4  ;;  %1700 = vmatprep.subr.bf16.mxu1 %v3392_v5  ;;  %v3396_v8 = vld [vmem:[#allocation5 + $0x44] ss:$16 sps:$4 sm:$0xff]   ;;  %v3398_v9 = vld [vmem:[#allocation5 + $0x4c] ss:$16 sps:$4 sm:$0xff]   ;;  %v3400_v10 = vld [vmem:[#allocation5 + $0x40] ss:$16 sps:$4 sm:$0xff]  }
  0x82   :  { %v3401_v11 = vld [vmem:[#allocation5 + $0x48] ss:$16 sps:$4 sm:$0xff]   ;;  %v3402_v12 = vld [vmem:[#allocation5 + $0x64] ss:$16 sps:$4 sm:$0xff]   ;;  %v3404_v13 = vld [vmem:[#allocation5 + $0x6c] ss:$16 sps:$4 sm:$0xff]  }
  0x83   :  { %v3406_v14 = vld [vmem:[#allocation5 + $0x60] ss:$16 sps:$4 sm:$0xff]   ;;  %v3407_v15 = vld [vmem:[#allocation5 + $0x68] ss:$16 sps:$4 sm:$0xff]   ;;  %v3408_v16 = vld [vmem:[#allocation5 + $0x84] ss:$16 sps:$4 sm:$0xff]  }
  0x84   :  { %1537 = vmatpush1.bf16.msra.mxu0 %v3394_v6  ;;  %1701 = vmatpush1.bf16.msra.mxu1 %v3395_v7  ;;  %v3410_v17 = vld [vmem:[#allocation5 + $0x8c] ss:$16 sps:$4 sm:$0xff]   ;;  %v3412_v18 = vld [vmem:[#allocation5 + $0x80] ss:$16 sps:$4 sm:$0xff]   ;;  %v3413_v19 = vld [vmem:[#allocation5 + $0x88] ss:$16 sps:$4 sm:$0xff]  }
  0x85   :  { %1538 = vmatprep.subr.bf16.mxu0 %v3396_v8  ;;  %1702 = vmatprep.subr.bf16.mxu1 %v3398_v9  ;;  %v3414_v20 = vld [vmem:[#allocation5 + $0xa4] ss:$16 sps:$4 sm:$0xff]   ;;  %v3416_v21 = vld [vmem:[#allocation5 + $0xac] ss:$16 sps:$4 sm:$0xff]   ;;  %v3418_v22 = vld [vmem:[#allocation5 + $0xa0] ss:$16 sps:$4 sm:$0xff]  }
  0x86   :  { %v3419_v23 = vld [vmem:[#allocation5 + $0xa8] ss:$16 sps:$4 sm:$0xff]   ;;  %v3420_v24 = vld [vmem:[#allocation5 + $0xc4] ss:$16 sps:$4 sm:$0xff]   ;;  %v3422_v25 = vld [vmem:[#allocation5 + $0xcc] ss:$16 sps:$4 sm:$0xff]  }
  0x87   :  { %v3424_v26 = vld [vmem:[#allocation5 + $0xc0] ss:$16 sps:$4 sm:$0xff]   ;;  %v3425_v27 = vld [vmem:[#allocation5 + $0xc8] ss:$16 sps:$4 sm:$0xff]   ;;  %v3426_v28 = vld [vmem:[#allocation5 + $0xe4] ss:$16 sps:$4 sm:$0xff]  }
  0x88   :  { %1539 = vmatpush1.bf16.msra.mxu0 %v3400_v10  ;;  %1703 = vmatpush1.bf16.msra.mxu1 %v3401_v11  ;;  %v3428_v29 = vld [vmem:[#allocation5 + $0xec] ss:$16 sps:$4 sm:$0xff]   ;;  %v3430_v30 = vld [vmem:[#allocation5 + $0xe0] ss:$16 sps:$4 sm:$0xff]   ;;  %v3431_v31 = vld [vmem:[#allocation5 + $0xe8] ss:$16 sps:$4 sm:$0xff]  }
  0x89   :  { %1540 = vmatprep.subr.bf16.mxu0 %v3402_v12  ;;  %1704 = vmatprep.subr.bf16.mxu1 %v3404_v13  ;;  %v3432_v32 = vld [vmem:[#allocation5 + $0x104] ss:$16 sps:$4 sm:$0xff]   ;;  %v3434_v33 = vld [vmem:[#allocation5 + $0x10c] ss:$16 sps:$4 sm:$0xff]   ;;  %v3436_v34 = vld [vmem:[#allocation5 + $0x100] ss:$16 sps:$4 sm:$0xff]  }
  0x8a   :  { %v3437_v35 = vld [vmem:[#allocation5 + $0x108] ss:$16 sps:$4 sm:$0xff]   ;;  %v3438_v36 = vld [vmem:[#allocation5 + $0x124] ss:$16 sps:$4 sm:$0xff]   ;;  %v3440_v37 = vld [vmem:[#allocation5 + $0x12c] ss:$16 sps:$4 sm:$0xff]  }
  0x8b   :  { %v3442_v38 = vld [vmem:[#allocation5 + $0x120] ss:$16 sps:$4 sm:$0xff]   ;;  %v3443_v39 = vld [vmem:[#allocation5 + $0x128] ss:$16 sps:$4 sm:$0xff]   ;;  %v3444_v40 = vld [vmem:[#allocation5 + $0x144] ss:$16 sps:$4 sm:$0xff]  }
  0x8c   :  { %1541 = vmatpush1.bf16.msra.mxu0 %v3406_v14  ;;  %1705 = vmatpush1.bf16.msra.mxu1 %v3407_v15  ;;  %v3446_v41 = vld [vmem:[#allocation5 + $0x14c] ss:$16 sps:$4 sm:$0xff]   ;;  %v3448_v42 = vld [vmem:[#allocation5 + $0x140] ss:$16 sps:$4 sm:$0xff]   ;;  %v3449_v43 = vld [vmem:[#allocation5 + $0x148] ss:$16 sps:$4 sm:$0xff]  }
  0x8d   :  { %1542 = vmatprep.subr.bf16.mxu0 %v3408_v16  ;;  %1706 = vmatprep.subr.bf16.mxu1 %v3410_v17  ;;  %v3450_v44 = vld [vmem:[#allocation5 + $0x164] ss:$16 sps:$4 sm:$0xff]   ;;  %v3452_v45 = vld [vmem:[#allocation5 + $0x16c] ss:$16 sps:$4 sm:$0xff]   ;;  %v3454_v47 = vld [vmem:[#allocation5 + $0x160] ss:$16 sps:$4 sm:$0xff]  }
  0x8e   :  { %v139_v46 = vld [vmem:[#allocation2] sm:$0xff]  ;;  %v3458_v51 = vld [vmem:[#allocation5 + $0x18c] ss:$16 sps:$4 sm:$0xff]   ;;  %v3460_v52 = vld [vmem:[#allocation5 + $0x180] ss:$16 sps:$4 sm:$0xff]   ;;  %vm4064_vm0 = vmmov 0  }
  0x8f   :  { %v2886_v48 = vcombine.high %v139_v46, %v139_v46  ;;  %v3455_v49 = vld [vmem:[#allocation5 + $0x168] ss:$16 sps:$4 sm:$0xff]   ;;  %v3456_v50 = vld [vmem:[#allocation5 + $0x184] ss:$16 sps:$4 sm:$0xff]   ;;  %v3464_v55 = vld [vmem:[#allocation5 + $0x1ac] ss:$16 sps:$4 sm:$0xff]   ;;  %v2885_v4 = vcombine.low %v139_v46, %v139_v46 }
  0x90   :  { %1543 = vmatpush1.bf16.msra.mxu0 %v3412_v18  ;;  %1707 = vmatpush1.bf16.msra.mxu1 %v3413_v19  ;;  %v3461_v53 = vld [vmem:[#allocation5 + $0x188] ss:$16 sps:$4 sm:$0xff]   ;;  %v3462_v54 = vld [vmem:[#allocation5 + $0x1a4] ss:$16 sps:$4 sm:$0xff]   ;;  %v3466_v56 = vld [vmem:[#allocation5 + $0x1a0] ss:$16 sps:$4 sm:$0xff]  }
  0x91   :  { %1544 = vmatprep.subr.bf16.mxu0 %v3414_v20  ;;  %1708 = vmatprep.subr.bf16.mxu1 %v3416_v21  ;;  %v3467_v57 = vld [vmem:[#allocation5 + $0x1a8] ss:$16 sps:$4 sm:$0xff]   ;;  %v3468_v58 = vld [vmem:[#allocation5 + $0x1c4] ss:$16 sps:$4 sm:$0xff]   ;;  %v3470_v59 = vld [vmem:[#allocation5 + $0x1cc] ss:$16 sps:$4 sm:$0xff]  }
  0x92   :  { %1566 = vmatprep.mubr.bf16.mxu0 %v2886_v48  ;;  %1730 = vmatprep.mubr.bf16.mxu1 %v2886_v48  ;;  %v3472_v60 = vld [vmem:[#allocation5 + $0x1c0] ss:$16 sps:$4 sm:$0xff]   ;;  %v3473_v61 = vld [vmem:[#allocation5 + $0x1c8] ss:$16 sps:$4 sm:$0xff]   ;;  %v3474_v62 = vld [vmem:[#allocation5 + $0x1e4] ss:$16 sps:$4 sm:$0xff]  }
  0x93   :  { %v3476_v63 = vld [vmem:[#allocation5 + $0x1ec] ss:$16 sps:$4 sm:$0xff]   ;;  %v3478_v0 = vld [vmem:[#allocation5 + $0x1e0] ss:$16 sps:$4 sm:$0xff]   ;;  %v3479_v1 = vld [vmem:[#allocation5 + $0x1e8] ss:$16 sps:$4 sm:$0xff]  }
  0x94   :  { %1545 = vmatpush1.bf16.msra.mxu0 %v3418_v22  ;;  %1709 = vmatpush1.bf16.msra.mxu1 %v3419_v23  ;;  %v3484_v2 = vld [vmem:[#allocation5 + $0x204] ss:$16 sps:$4 sm:$0xff]   ;;  %v3487_v3 = vld [vmem:[#allocation5 + $0x20c] ss:$16 sps:$4 sm:$0xff]   ;;  %v3482_v5 = vld [vmem:[#allocation5 + $0x200] ss:$16 sps:$4 sm:$0xff]  }
  0x95   :  { %1546 = vmatprep.subr.bf16.mxu0 %v3420_v24  ;;  %1710 = vmatprep.subr.bf16.mxu1 %v3422_v25  ;;  %v3485_v6 = vld [vmem:[#allocation5 + $0x208] ss:$16 sps:$4 sm:$0xff]   ;;  %v3490_v7 = vld [vmem:[#allocation5 + $0x224] ss:$16 sps:$4 sm:$0xff]   ;;  %v3493_v8 = vld [vmem:[#allocation5 + $0x22c] ss:$16 sps:$4 sm:$0xff]  }
  0x96   :  { %v3488_v9 = vld [vmem:[#allocation5 + $0x220] ss:$16 sps:$4 sm:$0xff]   ;;  %v3491_v10 = vld [vmem:[#allocation5 + $0x228] ss:$16 sps:$4 sm:$0xff]   ;;  %v3496_v11 = vld [vmem:[#allocation5 + $0x244] ss:$16 sps:$4 sm:$0xff]  }
  0x97   :  { %v3499_v12 = vld [vmem:[#allocation5 + $0x24c] ss:$16 sps:$4 sm:$0xff]   ;;  %v3494_v13 = vld [vmem:[#allocation5 + $0x240] ss:$16 sps:$4 sm:$0xff]   ;;  %v3497_v14 = vld [vmem:[#allocation5 + $0x248] ss:$16 sps:$4 sm:$0xff]  }
  0x98   :  { %1547 = vmatpush1.bf16.msra.mxu0 %v3424_v26  ;;  %1711 = vmatpush1.bf16.msra.mxu1 %v3425_v27  ;;  %v3502_v15 = vld [vmem:[#allocation5 + $0x264] ss:$16 sps:$4 sm:$0xff]   ;;  %v3505_v16 = vld [vmem:[#allocation5 + $0x26c] ss:$16 sps:$4 sm:$0xff]   ;;  %v3500_v17 = vld [vmem:[#allocation5 + $0x260] ss:$16 sps:$4 sm:$0xff]  }
  0x99   :  { %1548 = vmatprep.subr.bf16.mxu0 %v3426_v28  ;;  %1712 = vmatprep.subr.bf16.mxu1 %v3428_v29  ;;  %v3503_v18 = vld [vmem:[#allocation5 + $0x268] ss:$16 sps:$4 sm:$0xff]   ;;  %v3508_v19 = vld [vmem:[#allocation5 + $0x284] ss:$16 sps:$4 sm:$0xff]   ;;  %v3511_v20 = vld [vmem:[#allocation5 + $0x28c] ss:$16 sps:$4 sm:$0xff]  }
  0x9a   :  { %v3506_v21 = vld [vmem:[#allocation5 + $0x280] ss:$16 sps:$4 sm:$0xff]   ;;  %v3509_v22 = vld [vmem:[#allocation5 + $0x288] ss:$16 sps:$4 sm:$0xff]   ;;  %v3514_v23 = vld [vmem:[#allocation5 + $0x2a4] ss:$16 sps:$4 sm:$0xff]  }
  0x9b   :  { %v3517_v24 = vld [vmem:[#allocation5 + $0x2ac] ss:$16 sps:$4 sm:$0xff]   ;;  %v3512_v25 = vld [vmem:[#allocation5 + $0x2a0] ss:$16 sps:$4 sm:$0xff]   ;;  %v3515_v26 = vld [vmem:[#allocation5 + $0x2a8] ss:$16 sps:$4 sm:$0xff]  }
  0x9c   :  { %1549 = vmatpush1.bf16.msra.mxu0 %v3430_v30  ;;  %1713 = vmatpush1.bf16.msra.mxu1 %v3431_v31  ;;  %v3520_v27 = vld [vmem:[#allocation5 + $0x2c4] ss:$16 sps:$4 sm:$0xff]   ;;  %v3523_v28 = vld [vmem:[#allocation5 + $0x2cc] ss:$16 sps:$4 sm:$0xff]   ;;  %v3518_v31 = vld [vmem:[#allocation5 + $0x2c0] ss:$16 sps:$4 sm:$0xff]  }
  0x9d   :  { %1550 = vmatprep.subr.bf16.mxu0 %v3432_v32  ;;  %1714 = vmatprep.subr.bf16.mxu1 %v3434_v33  ;;  %v4232_v29 = vld [vmem:[#allocation2 + $0x8] sm:$0xff]  ;;  %v3521_v32 = vld [vmem:[#allocation5 + $0x2c8] ss:$16 sps:$4 sm:$0xff]   ;;  %v3526_v33 = vld [vmem:[#allocation5 + $0x2e4] ss:$16 sps:$4 sm:$0xff]   ;;  %s4065_s5 = smov [#allocation14]  }
  0x9e   :  { %v2888_v30 = vcombine.high %v4232_v29, %v4232_v29  ;;  %v3547_v46 = vld [vmem:[#allocation5 + $0x34c] ss:$16 sps:$4 sm:$0xff]   ;;  %v3545_v48 = vld [vmem:[#allocation5 + $0x348] ss:$16 sps:$4 sm:$0xff]   ;;  %s2873_s23 = sshll.u32 %s4065_s5, 4  ;;  %s2874_s23 = int_to_ptr.vmem [resolvable:$true] %s2873_s23 }
  0x9f   :  { %p4022_p1 = scmp.lt.s32.totalorder %s2874_s23, %s2874_s23 }
  0xa0   :  { %1551 = vmatpush1.bf16.msra.mxu0 %v3436_v34  ;;  %1715 = vmatpush1.bf16.msra.mxu1 %v3437_v35  ;;  %v3529_v34 = vld [vmem:[#allocation5 + $0x2ec] ss:$16 sps:$4 sm:$0xff]   ;;  %v3524_v35 = vld [vmem:[#allocation5 + $0x2e0] ss:$16 sps:$4 sm:$0xff]  }
  0xa1   :  { %1552 = vmatprep.subr.bf16.mxu0 %v3438_v36  ;;  %1716 = vmatprep.subr.bf16.mxu1 %v3440_v37  ;;  %v3527_v36 = vld [vmem:[#allocation5 + $0x2e8] ss:$16 sps:$4 sm:$0xff]   ;;  %v3532_v37 = vld [vmem:[#allocation5 + $0x304] ss:$16 sps:$4 sm:$0xff]  }
  0xa4   :  { %1553 = vmatpush1.bf16.msra.mxu0 %v3442_v38  ;;  %1717 = vmatpush1.bf16.msra.mxu1 %v3443_v39  ;;  %v3535_v38 = vld [vmem:[#allocation5 + $0x30c] ss:$16 sps:$4 sm:$0xff]   ;;  %v3530_v39 = vld [vmem:[#allocation5 + $0x300] ss:$16 sps:$4 sm:$0xff]  }
  0xa5   :  { %1554 = vmatprep.subr.bf16.mxu0 %v3444_v40  ;;  %1718 = vmatprep.subr.bf16.mxu1 %v3446_v41  ;;  %v3533_v40 = vld [vmem:[#allocation5 + $0x308] ss:$16 sps:$4 sm:$0xff]   ;;  %v3538_v41 = vld [vmem:[#allocation5 + $0x324] ss:$16 sps:$4 sm:$0xff]  }
  0xa8   :  { %1555 = vmatpush1.bf16.msra.mxu0 %v3448_v42  ;;  %1719 = vmatpush1.bf16.msra.mxu1 %v3449_v43  ;;  %v3541_v42 = vld [vmem:[#allocation5 + $0x32c] ss:$16 sps:$4 sm:$0xff]   ;;  %v3536_v43 = vld [vmem:[#allocation5 + $0x320] ss:$16 sps:$4 sm:$0xff]  }
  0xa9   :  { %1556 = vmatprep.subr.bf16.mxu0 %v3450_v44  ;;  %1720 = vmatprep.subr.bf16.mxu1 %v3452_v45  ;;  %v3539_v44 = vld [vmem:[#allocation5 + $0x328] ss:$16 sps:$4 sm:$0xff]   ;;  %v3544_v45 = vld [vmem:[#allocation5 + $0x344] ss:$16 sps:$4 sm:$0xff]  }
  0xac   :  { %1557 = vmatpush1.bf16.msra.mxu0 %v3454_v47  ;;  %1721 = vmatpush1.bf16.msra.mxu1 %v3455_v49  ;;  %v3542_v47 = vld [vmem:[#allocation5 + $0x340] ss:$16 sps:$4 sm:$0xff]   ;;  %v3550_v49 = vld [vmem:[#allocation5 + $0x364] ss:$16 sps:$4 sm:$0xff]  }
  0xad   :  { %1558 = vmatprep.subr.bf16.mxu0 %v3456_v50  ;;  %1722 = vmatprep.subr.bf16.mxu1 %v3458_v51  ;;  %v3553_v50 = vld [vmem:[#allocation5 + $0x36c] ss:$16 sps:$4 sm:$0xff]   ;;  %v3548_v51 = vld [vmem:[#allocation5 + $0x360] ss:$16 sps:$4 sm:$0xff]  }
  0xb0   :  { %1559 = vmatpush1.bf16.msra.mxu0 %v3460_v52  ;;  %1723 = vmatpush1.bf16.msra.mxu1 %v3461_v53  ;;  %v3551_v52 = vld [vmem:[#allocation5 + $0x368] ss:$16 sps:$4 sm:$0xff]   ;;  %v3556_v53 = vld [vmem:[#allocation5 + $0x384] ss:$16 sps:$4 sm:$0xff]  }
  0xb1   :  { %1560 = vmatprep.subr.bf16.mxu0 %v3462_v54  ;;  %1724 = vmatprep.subr.bf16.mxu1 %v3464_v55  ;;  %v3559_v54 = vld [vmem:[#allocation5 + $0x38c] ss:$16 sps:$4 sm:$0xff]   ;;  %v3554_v55 = vld [vmem:[#allocation5 + $0x380] ss:$16 sps:$4 sm:$0xff]  }
  0xb4   :  { %1561 = vmatpush1.bf16.msra.mxu0 %v3466_v56  ;;  %1725 = vmatpush1.bf16.msra.mxu1 %v3467_v57  ;;  %v3557_v56 = vld [vmem:[#allocation5 + $0x388] ss:$16 sps:$4 sm:$0xff]   ;;  %v3562_v57 = vld [vmem:[#allocation5 + $0x3a4] ss:$16 sps:$4 sm:$0xff]  }
  0xb5   :  { %1562 = vmatprep.subr.bf16.mxu0 %v3468_v58  ;;  %1726 = vmatprep.subr.bf16.mxu1 %v3470_v59  ;;  %v3565_v58 = vld [vmem:[#allocation5 + $0x3ac] ss:$16 sps:$4 sm:$0xff]   ;;  %v3560_v59 = vld [vmem:[#allocation5 + $0x3a0] ss:$16 sps:$4 sm:$0xff]  }
  0xb8   :  { %1563 = vmatpush1.bf16.msra.mxu0 %v3472_v60  ;;  %1727 = vmatpush1.bf16.msra.mxu1 %v3473_v61  ;;  %v3563_v60 = vld [vmem:[#allocation5 + $0x3a8] ss:$16 sps:$4 sm:$0xff]   ;;  %v3568_v61 = vld [vmem:[#allocation5 + $0x3c4] ss:$16 sps:$4 sm:$0xff]  }
  0xb9   :  { %1564 = vmatprep.subr.bf16.mxu0 %v3474_v62  ;;  %1728 = vmatprep.subr.bf16.mxu1 %v3476_v63  ;;  %v3571_v62 = vld [vmem:[#allocation5 + $0x3cc] ss:$16 sps:$4 sm:$0xff]   ;;  %v3566_v63 = vld [vmem:[#allocation5 + $0x3c0] ss:$16 sps:$4 sm:$0xff]  }
  0xbc   :  { %1565 = vmatpush1.bf16.msra.mxu0 %v3478_v0  ;;  %1729 = vmatpush1.bf16.msra.mxu1 %v3479_v1  ;;  %v3569_v0 = vld [vmem:[#allocation5 + $0x3c8] ss:$16 sps:$4 sm:$0xff]   ;;  %v3574_v1 = vld [vmem:[#allocation5 + $0x3e4] ss:$16 sps:$4 sm:$0xff]  }
  0xbd   :  { %1575 = vmatprep.subr.bf16.mxu0 %v3484_v2  ;;  %1739 = vmatprep.subr.bf16.mxu1 %v3487_v3  ;;  %v3577_v2 = vld [vmem:[#allocation5 + $0x3ec] ss:$16 sps:$4 sm:$0xff]   ;;  %v3572_v3 = vld [vmem:[#allocation5 + $0x3e0] ss:$16 sps:$4 sm:$0xff]  }
  0xbf   :  { %1567 = vmatmul.mubr.bf16.vlgmr.msra.gmra.mrb[0].mxu0 %v2885_v4  ;;  %1731 = vmatmul.mubr.bf16.vlgmr.msra.gmra.mrb[0].mxu1 %v2885_v4  ;;  %v3575_v4 = vld [vmem:[#allocation5 + $0x3e8] ss:$16 sps:$4 sm:$0xff]  }
  0xc0   :  { %1576 = vmatpush1.bf16.msra.mxu0 %v3482_v5  ;;  %1740 = vmatpush1.bf16.msra.mxu1 %v3485_v6  ;;  %v3582_v5 = vld [vmem:[#allocation5 + $0x404] ss:$16 sps:$4 sm:$0xff]   ;;  %v3585_v6 = vld [vmem:[#allocation5 + $0x40c] ss:$16 sps:$4 sm:$0xff]  }
  0xc1   :  { %1577 = vmatprep.subr.bf16.mxu0 %v3490_v7  ;;  %1741 = vmatprep.subr.bf16.mxu1 %v3493_v8  ;;  %v2887_v7 = vcombine.low %v4232_v29, %v4232_v29  ;;  %v3580_v8 = vld [vmem:[#allocation5 + $0x400] ss:$16 sps:$4 sm:$0xff]   ;;  %v3615_v29 = vld [vmem:[#allocation5 + $0x4ac] ss:$16 sps:$4 sm:$0xff]  }
  0xc2   :  { %1607 = vmatprep.mubr.bf16.mxu0 %v2888_v30  ;;  %1771 = vmatprep.mubr.bf16.mxu1 %v2888_v30  ;;  %v3610_v30 = vld [vmem:[#allocation5 + $0x4a0] ss:$16 sps:$4 sm:$0xff]  }
  0xc4   :  { %1578 = vmatpush1.bf16.msra.mxu0 %v3488_v9  ;;  %1742 = vmatpush1.bf16.msra.mxu1 %v3491_v10  ;;  %v3583_v9 = vld [vmem:[#allocation5 + $0x408] ss:$16 sps:$4 sm:$0xff]   ;;  %v3588_v10 = vld [vmem:[#allocation5 + $0x424] ss:$16 sps:$4 sm:$0xff]  }
  0xc5   :  { %1579 = vmatprep.subr.bf16.mxu0 %v3496_v11  ;;  %1743 = vmatprep.subr.bf16.mxu1 %v3499_v12  ;;  %v4238_v11 = vld [vmem:[#allocation2 + $0x10] sm:$0xff]  ;;  %v3591_v12 = vld [vmem:[#allocation5 + $0x42c] ss:$16 sps:$4 sm:$0xff]  }
  0xc8   :  { %1580 = vmatpush1.bf16.msra.mxu0 %v3494_v13  ;;  %1744 = vmatpush1.bf16.msra.mxu1 %v3497_v14  ;;  %v2890_v13 = vcombine.high %v4238_v11, %v4238_v11  ;;  %v3586_v14 = vld [vmem:[#allocation5 + $0x420] ss:$16 sps:$4 sm:$0xff]  }
  0xc9   :  { %1581 = vmatprep.subr.bf16.mxu0 %v3502_v15  ;;  %1745 = vmatprep.subr.bf16.mxu1 %v3505_v16  ;;  %v3589_v15 = vld [vmem:[#allocation5 + $0x428] ss:$16 sps:$4 sm:$0xff]   ;;  %v3594_v16 = vld [vmem:[#allocation5 + $0x444] ss:$16 sps:$4 sm:$0xff]  }
  0xcc   :  { %1582 = vmatpush1.bf16.msra.mxu0 %v3500_v17  ;;  %1746 = vmatpush1.bf16.msra.mxu1 %v3503_v18  ;;  %v3597_v17 = vld [vmem:[#allocation5 + $0x44c] ss:$16 sps:$4 sm:$0xff]   ;;  %v3592_v18 = vld [vmem:[#allocation5 + $0x440] ss:$16 sps:$4 sm:$0xff]  }
  0xcd   :  { %1583 = vmatprep.subr.bf16.mxu0 %v3508_v19  ;;  %1747 = vmatprep.subr.bf16.mxu1 %v3511_v20  ;;  %v3595_v19 = vld [vmem:[#allocation5 + $0x448] ss:$16 sps:$4 sm:$0xff]   ;;  %v3600_v20 = vld [vmem:[#allocation5 + $0x464] ss:$16 sps:$4 sm:$0xff]  }
  0xd0   :  { %1584 = vmatpush1.bf16.msra.mxu0 %v3506_v21  ;;  %1748 = vmatpush1.bf16.msra.mxu1 %v3509_v22  ;;  %v3603_v21 = vld [vmem:[#allocation5 + $0x46c] ss:$16 sps:$4 sm:$0xff]   ;;  %v3598_v22 = vld [vmem:[#allocation5 + $0x460] ss:$16 sps:$4 sm:$0xff]  }
  0xd1   :  { %1585 = vmatprep.subr.bf16.mxu0 %v3514_v23  ;;  %1749 = vmatprep.subr.bf16.mxu1 %v3517_v24  ;;  %v3601_v23 = vld [vmem:[#allocation5 + $0x468] ss:$16 sps:$4 sm:$0xff]   ;;  %v3606_v24 = vld [vmem:[#allocation5 + $0x484] ss:$16 sps:$4 sm:$0xff]  }
  0xd4   :  { %1586 = vmatpush1.bf16.msra.mxu0 %v3512_v25  ;;  %1750 = vmatpush1.bf16.msra.mxu1 %v3515_v26  ;;  %v3609_v25 = vld [vmem:[#allocation5 + $0x48c] ss:$16 sps:$4 sm:$0xff]   ;;  %v3604_v26 = vld [vmem:[#allocation5 + $0x480] ss:$16 sps:$4 sm:$0xff]  }
  0xd5   :  { %1587 = vmatprep.subr.bf16.mxu0 %v3520_v27  ;;  %1751 = vmatprep.subr.bf16.mxu1 %v3523_v28  ;;  %v3607_v27 = vld [vmem:[#allocation5 + $0x488] ss:$16 sps:$4 sm:$0xff]   ;;  %v3612_v28 = vld [vmem:[#allocation5 + $0x4a4] ss:$16 sps:$4 sm:$0xff]  }
  0xd8   :  { %1588 = vmatpush1.bf16.msra.mxu0 %v3518_v31  ;;  %1752 = vmatpush1.bf16.msra.mxu1 %v3521_v32  ;;  %v3613_v31 = vld [vmem:[#allocation5 + $0x4a8] ss:$16 sps:$4 sm:$0xff]   ;;  %v3618_v32 = vld [vmem:[#allocation5 + $0x4c4] ss:$16 sps:$4 sm:$0xff]  }
  0xd9   :  { %1589 = vmatprep.subr.bf16.mxu0 %v3526_v33  ;;  %1753 = vmatprep.subr.bf16.mxu1 %v3529_v34  ;;  %v3621_v33 = vld [vmem:[#allocation5 + $0x4cc] ss:$16 sps:$4 sm:$0xff]   ;;  %v3616_v34 = vld [vmem:[#allocation5 + $0x4c0] ss:$16 sps:$4 sm:$0xff]  }
  0xdc   :  { %1590 = vmatpush1.bf16.msra.mxu0 %v3524_v35  ;;  %1754 = vmatpush1.bf16.msra.mxu1 %v3527_v36  ;;  %v3619_v35 = vld [vmem:[#allocation5 + $0x4c8] ss:$16 sps:$4 sm:$0xff]   ;;  %v3624_v36 = vld [vmem:[#allocation5 + $0x4e4] ss:$16 sps:$4 sm:$0xff]  }
  0xdd   :  { %1591 = vmatprep.subr.bf16.mxu0 %v3532_v37  ;;  %1755 = vmatprep.subr.bf16.mxu1 %v3535_v38  ;;  %v3627_v37 = vld [vmem:[#allocation5 + $0x4ec] ss:$16 sps:$4 sm:$0xff]   ;;  %v3622_v38 = vld [vmem:[#allocation5 + $0x4e0] ss:$16 sps:$4 sm:$0xff]  }
  0xe0   :  { %1592 = vmatpush1.bf16.msra.mxu0 %v3530_v39  ;;  %1756 = vmatpush1.bf16.msra.mxu1 %v3533_v40  ;;  %v3625_v39 = vld [vmem:[#allocation5 + $0x4e8] ss:$16 sps:$4 sm:$0xff]   ;;  %v3630_v40 = vld [vmem:[#allocation5 + $0x504] ss:$16 sps:$4 sm:$0xff]  }
  0xe1   :  { %1593 = vmatprep.subr.bf16.mxu0 %v3538_v41  ;;  %1757 = vmatprep.subr.bf16.mxu1 %v3541_v42  ;;  %v3633_v41 = vld [vmem:[#allocation5 + $0x50c] ss:$16 sps:$4 sm:$0xff]   ;;  %v3628_v42 = vld [vmem:[#allocation5 + $0x500] ss:$16 sps:$4 sm:$0xff]  }
  0xe4   :  { %1594 = vmatpush1.bf16.msra.mxu0 %v3536_v43  ;;  %1758 = vmatpush1.bf16.msra.mxu1 %v3539_v44  ;;  %v3631_v43 = vld [vmem:[#allocation5 + $0x508] ss:$16 sps:$4 sm:$0xff]   ;;  %v3636_v44 = vld [vmem:[#allocation5 + $0x524] ss:$16 sps:$4 sm:$0xff]  }
  0xe5   :  { %1595 = vmatprep.subr.bf16.mxu0 %v3544_v45  ;;  %1759 = vmatprep.subr.bf16.mxu1 %v3547_v46  ;;  %v3639_v45 = vld [vmem:[#allocation5 + $0x52c] ss:$16 sps:$4 sm:$0xff]   ;;  %v3634_v46 = vld [vmem:[#allocation5 + $0x520] ss:$16 sps:$4 sm:$0xff]  }
  0xe8   :  { %1596 = vmatpush1.bf16.msra.mxu0 %v3542_v47  ;;  %1760 = vmatpush1.bf16.msra.mxu1 %v3545_v48  ;;  %v3637_v47 = vld [vmem:[#allocation5 + $0x528] ss:$16 sps:$4 sm:$0xff]   ;;  %v3642_v48 = vld [vmem:[#allocation5 + $0x544] ss:$16 sps:$4 sm:$0xff]  }
  0xe9   :  { %1597 = vmatprep.subr.bf16.mxu0 %v3550_v49  ;;  %1761 = vmatprep.subr.bf16.mxu1 %v3553_v50  ;;  %v3645_v49 = vld [vmem:[#allocation5 + $0x54c] ss:$16 sps:$4 sm:$0xff]   ;;  %v3640_v50 = vld [vmem:[#allocation5 + $0x540] ss:$16 sps:$4 sm:$0xff]  }
  0xec   :  { %1598 = vmatpush1.bf16.msra.mxu0 %v3548_v51  ;;  %1762 = vmatpush1.bf16.msra.mxu1 %v3551_v52  ;;  %v3643_v51 = vld [vmem:[#allocation5 + $0x548] ss:$16 sps:$4 sm:$0xff]   ;;  %v3648_v52 = vld [vmem:[#allocation5 + $0x564] ss:$16 sps:$4 sm:$0xff]  }
  0xed   :  { %1599 = vmatprep.subr.bf16.mxu0 %v3556_v53  ;;  %1763 = vmatprep.subr.bf16.mxu1 %v3559_v54  ;;  %v3651_v53 = vld [vmem:[#allocation5 + $0x56c] ss:$16 sps:$4 sm:$0xff]   ;;  %v3646_v54 = vld [vmem:[#allocation5 + $0x560] ss:$16 sps:$4 sm:$0xff]  }
  0xf0   :  { %1600 = vmatpush1.bf16.msra.mxu0 %v3554_v55  ;;  %1764 = vmatpush1.bf16.msra.mxu1 %v3557_v56  ;;  %v3649_v55 = vld [vmem:[#allocation5 + $0x568] ss:$16 sps:$4 sm:$0xff]   ;;  %v3654_v56 = vld [vmem:[#allocation5 + $0x584] ss:$16 sps:$4 sm:$0xff]  }
  0xf1   :  { %1601 = vmatprep.subr.bf16.mxu0 %v3562_v57  ;;  %1765 = vmatprep.subr.bf16.mxu1 %v3565_v58  ;;  %v3657_v57 = vld [vmem:[#allocation5 + $0x58c] ss:$16 sps:$4 sm:$0xff]   ;;  %v3652_v58 = vld [vmem:[#allocation5 + $0x580] ss:$16 sps:$4 sm:$0xff]  }
  0xf4   :  { %1602 = vmatpush1.bf16.msra.mxu0 %v3560_v59  ;;  %1766 = vmatpush1.bf16.msra.mxu1 %v3563_v60  ;;  %v3655_v59 = vld [vmem:[#allocation5 + $0x588] ss:$16 sps:$4 sm:$0xff]   ;;  %v3660_v60 = vld [vmem:[#allocation5 + $0x5a4] ss:$16 sps:$4 sm:$0xff]  }
  0xf5   :  { %1603 = vmatprep.subr.bf16.mxu0 %v3568_v61  ;;  %1767 = vmatprep.subr.bf16.mxu1 %v3571_v62  ;;  %v3663_v61 = vld [vmem:[#allocation5 + $0x5ac] ss:$16 sps:$4 sm:$0xff]   ;;  %v3658_v62 = vld [vmem:[#allocation5 + $0x5a0] ss:$16 sps:$4 sm:$0xff]  }
  0xf8   :  { %1604 = vmatpush1.bf16.msra.mxu0 %v3566_v63  ;;  %1768 = vmatpush1.bf16.msra.mxu1 %v3569_v0  ;;  %v3661_v63 = vld [vmem:[#allocation5 + $0x5a8] ss:$16 sps:$4 sm:$0xff]   ;;  %v3666_v0 = vld [vmem:[#allocation5 + $0x5c4] ss:$16 sps:$4 sm:$0xff]  }
  0xf9   :  { %1605 = vmatprep.subr.bf16.mxu0 %v3574_v1  ;;  %1769 = vmatprep.subr.bf16.mxu1 %v3577_v2  ;;  %v3669_v1 = vld [vmem:[#allocation5 + $0x5cc] ss:$16 sps:$4 sm:$0xff]   ;;  %v3664_v2 = vld [vmem:[#allocation5 + $0x5c0] ss:$16 sps:$4 sm:$0xff]  }
  0xfc   :  { %1606 = vmatpush1.bf16.msra.mxu0 %v3572_v3  ;;  %1770 = vmatpush1.bf16.msra.mxu1 %v3575_v4  ;;  %v3667_v3 = vld [vmem:[#allocation5 + $0x5c8] ss:$16 sps:$4 sm:$0xff]   ;;  %v3672_v4 = vld [vmem:[#allocation5 + $0x5e4] ss:$16 sps:$4 sm:$0xff]  }
  0xfd   :  { %1616 = vmatprep.subr.bf16.mxu0 %v3582_v5  ;;  %1780 = vmatprep.subr.bf16.mxu1 %v3585_v6  ;;  %v3675_v5 = vld [vmem:[#allocation5 + $0x5ec] ss:$16 sps:$4 sm:$0xff]   ;;  %v3670_v6 = vld [vmem:[#allocation5 + $0x5e0] ss:$16 sps:$4 sm:$0xff]  }
  0xff   :  { %1608 = vmatmul.mubr.bf16.vlgmr.msra.gmra.mrb[0].mxu0 %v2887_v7  ;;  %1772 = vmatmul.mubr.bf16.vlgmr.msra.gmra.mrb[0].mxu1 %v2887_v7  ;;  %v3673_v7 = vld [vmem:[#allocation5 + $0x5e8] ss:$16 sps:$4 sm:$0xff]  }
 0x100   :  { %1617 = vmatpush1.bf16.msra.mxu0 %v3580_v8  ;;  %1781 = vmatpush1.bf16.msra.mxu1 %v3583_v9  ;;  %v3680_v8 = vld [vmem:[#allocation5 + $0x604] ss:$16 sps:$4 sm:$0xff]   ;;  %v3683_v9 = vld [vmem:[#allocation5 + $0x60c] ss:$16 sps:$4 sm:$0xff]  }
 0x101   :  { %1618 = vmatprep.subr.bf16.mxu0 %v3588_v10  ;;  %1782 = vmatprep.subr.bf16.mxu1 %v3591_v12  ;;  %v3678_v10 = vld [vmem:[#allocation5 + $0x600] ss:$16 sps:$4 sm:$0xff]   ;;  %v3681_v12 = vld [vmem:[#allocation5 + $0x608] ss:$16 sps:$4 sm:$0xff]  }
 0x102   :  { %1648 = vmatprep.mubr.bf16.mxu0 %v2890_v13  ;;  %1812 = vmatprep.mubr.bf16.mxu1 %v2890_v13  ;;  %v2889_v13 = vcombine.low %v4238_v11, %v4238_v11  ;;  %v3698_v11 = vld [vmem:[#allocation5 + $0x664] ss:$16 sps:$4 sm:$0xff]  }
 0x104   :  { %1619 = vmatpush1.bf16.msra.mxu0 %v3586_v14  ;;  %1783 = vmatpush1.bf16.msra.mxu1 %v3589_v15  ;;  %v3686_v14 = vld [vmem:[#allocation5 + $0x624] ss:$16 sps:$4 sm:$0xff]   ;;  %v3689_v15 = vld [vmem:[#allocation5 + $0x62c] ss:$16 sps:$4 sm:$0xff]  }
 0x105   :  { %1620 = vmatprep.subr.bf16.mxu0 %v3594_v16  ;;  %1784 = vmatprep.subr.bf16.mxu1 %v3597_v17  ;;  %v3684_v16 = vld [vmem:[#allocation5 + $0x620] ss:$16 sps:$4 sm:$0xff]   ;;  %v3687_v17 = vld [vmem:[#allocation5 + $0x628] ss:$16 sps:$4 sm:$0xff]  }
 0x108   :  { %1621 = vmatpush1.bf16.msra.mxu0 %v3592_v18  ;;  %1785 = vmatpush1.bf16.msra.mxu1 %v3595_v19  ;;  %v3692_v18 = vld [vmem:[#allocation5 + $0x644] ss:$16 sps:$4 sm:$0xff]   ;;  %v3695_v19 = vld [vmem:[#allocation5 + $0x64c] ss:$16 sps:$4 sm:$0xff]  }
 0x109   :  { %1622 = vmatprep.subr.bf16.mxu0 %v3600_v20  ;;  %1786 = vmatprep.subr.bf16.mxu1 %v3603_v21  ;;  %v3690_v20 = vld [vmem:[#allocation5 + $0x640] ss:$16 sps:$4 sm:$0xff]   ;;  %v3693_v21 = vld [vmem:[#allocation5 + $0x648] ss:$16 sps:$4 sm:$0xff]  }
 0x10c   :  { %1623 = vmatpush1.bf16.msra.mxu0 %v3598_v22  ;;  %1787 = vmatpush1.bf16.msra.mxu1 %v3601_v23  ;;  %v4062_v22 = vmov 0   ;;  %v3701_v23 = vld [vmem:[#allocation5 + $0x66c] ss:$16 sps:$4 sm:$0xff]  }
 0x10d   :  { %1624 = vmatprep.subr.bf16.mxu0 %v3606_v24  ;;  %1788 = vmatprep.subr.bf16.mxu1 %v3609_v25  ;;  %v3696_v24 = vld [vmem:[#allocation5 + $0x660] ss:$16 sps:$4 sm:$0xff]   ;;  %v3699_v25 = vld [vmem:[#allocation5 + $0x668] ss:$16 sps:$4 sm:$0xff]  }
 0x110   :  { %1625 = vmatpush1.bf16.msra.mxu0 %v3604_v26  ;;  %1789 = vmatpush1.bf16.msra.mxu1 %v3607_v27  ;;  %v3704_v26 = vld [vmem:[#allocation5 + $0x684] ss:$16 sps:$4 sm:$0xff]   ;;  %v3707_v27 = vld [vmem:[#allocation5 + $0x68c] ss:$16 sps:$4 sm:$0xff]  }
 0x111   :  { %1626 = vmatprep.subr.bf16.mxu0 %v3612_v28  ;;  %1790 = vmatprep.subr.bf16.mxu1 %v3615_v29  ;;  %v3702_v28 = vld [vmem:[#allocation5 + $0x680] ss:$16 sps:$4 sm:$0xff]   ;;  %v3705_v29 = vld [vmem:[#allocation5 + $0x688] ss:$16 sps:$4 sm:$0xff]  }
 0x114   :  { %1627 = vmatpush1.bf16.msra.mxu0 %v3610_v30  ;;  %1791 = vmatpush1.bf16.msra.mxu1 %v3613_v31  ;;  %v3710_v30 = vld [vmem:[#allocation5 + $0x6a4] ss:$16 sps:$4 sm:$0xff]   ;;  %v3713_v31 = vld [vmem:[#allocation5 + $0x6ac] ss:$16 sps:$4 sm:$0xff]  }
 0x115   :  { %1628 = vmatprep.subr.bf16.mxu0 %v3618_v32  ;;  %1792 = vmatprep.subr.bf16.mxu1 %v3621_v33  ;;  %v3708_v32 = vld [vmem:[#allocation5 + $0x6a0] ss:$16 sps:$4 sm:$0xff]   ;;  %v3711_v33 = vld [vmem:[#allocation5 + $0x6a8] ss:$16 sps:$4 sm:$0xff]  }
 0x118   :  { %1629 = vmatpush1.bf16.msra.mxu0 %v3616_v34  ;;  %1793 = vmatpush1.bf16.msra.mxu1 %v3619_v35  ;;  %v3716_v34 = vld [vmem:[#allocation5 + $0x6c4] ss:$16 sps:$4 sm:$0xff]   ;;  %v3719_v35 = vld [vmem:[#allocation5 + $0x6cc] ss:$16 sps:$4 sm:$0xff]  }
 0x119   :  { %1630 = vmatprep.subr.bf16.mxu0 %v3624_v36  ;;  %1794 = vmatprep.subr.bf16.mxu1 %v3627_v37  ;;  %v3714_v36 = vld [vmem:[#allocation5 + $0x6c0] ss:$16 sps:$4 sm:$0xff]   ;;  %v3717_v37 = vld [vmem:[#allocation5 + $0x6c8] ss:$16 sps:$4 sm:$0xff]  }
 0x11c   :  { %1631 = vmatpush1.bf16.msra.mxu0 %v3622_v38  ;;  %1795 = vmatpush1.bf16.msra.mxu1 %v3625_v39  ;;  %v3722_v38 = vld [vmem:[#allocation5 + $0x6e4] ss:$16 sps:$4 sm:$0xff]   ;;  %v3725_v39 = vld [vmem:[#allocation5 + $0x6ec] ss:$16 sps:$4 sm:$0xff]  }
 0x11d   :  { %1632 = vmatprep.subr.bf16.mxu0 %v3630_v40  ;;  %1796 = vmatprep.subr.bf16.mxu1 %v3633_v41  ;;  %v3720_v40 = vld [vmem:[#allocation5 + $0x6e0] ss:$16 sps:$4 sm:$0xff]   ;;  %v3723_v41 = vld [vmem:[#allocation5 + $0x6e8] ss:$16 sps:$4 sm:$0xff]  }
 0x120   :  { %1633 = vmatpush1.bf16.msra.mxu0 %v3628_v42  ;;  %1797 = vmatpush1.bf16.msra.mxu1 %v3631_v43  ;;  %v3729_v42 = vld [vmem:[#allocation7 + $0x4] ss:$8 sps:$4 sm:$0xff]   ;;  %v3726_v43 = vld [vmem:[#allocation2 + $0x18] ss:$0 sps:$4 sm:$0xff]  }
 0x121   :  { %1634 = vmatprep.subr.bf16.mxu0 %v3636_v44  ;;  %1798 = vmatprep.subr.bf16.mxu1 %v3639_v45  ;;  %v3727_v44 = vld [vmem:[#allocation7] ss:$8 sps:$4 sm:$0xff]   ;;  %v3732_v45 = vld [vmem:[#allocation7 + $0x14] ss:$8 sps:$4 sm:$0xff]  }
 0x124   :  { %1635 = vmatpush1.bf16.msra.mxu0 %v3634_v46  ;;  %1799 = vmatpush1.bf16.msra.mxu1 %v3637_v47  ;;  %v3730_v46 = vld [vmem:[#allocation7 + $0x10] ss:$8 sps:$4 sm:$0xff]   ;;  %v3735_v47 = vld [vmem:[#allocation7 + $0x24] ss:$8 sps:$4 sm:$0xff]  }
 0x125   :  { %1636 = vmatprep.subr.bf16.mxu0 %v3642_v48  ;;  %1800 = vmatprep.subr.bf16.mxu1 %v3645_v49  ;;  %v3733_v48 = vld [vmem:[#allocation7 + $0x20] ss:$8 sps:$4 sm:$0xff]   ;;  %v3738_v49 = vld [vmem:[#allocation7 + $0x34] ss:$8 sps:$4 sm:$0xff]  }
 0x128   :  { %1637 = vmatpush1.bf16.msra.mxu0 %v3640_v50  ;;  %1801 = vmatpush1.bf16.msra.mxu1 %v3643_v51  ;;  %v3736_v50 = vld [vmem:[#allocation7 + $0x30] ss:$8 sps:$4 sm:$0xff]   ;;  %v3741_v51 = vld [vmem:[#allocation7 + $0x44] ss:$8 sps:$4 sm:$0xff]  }
 0x129   :  { %1638 = vmatprep.subr.bf16.mxu0 %v3648_v52  ;;  %1802 = vmatprep.subr.bf16.mxu1 %v3651_v53  ;;  %v3739_v52 = vld [vmem:[#allocation7 + $0x40] ss:$8 sps:$4 sm:$0xff]   ;;  %v3744_v53 = vld [vmem:[#allocation7 + $0x54] ss:$8 sps:$4 sm:$0xff]  }
 0x12c   :  { %1639 = vmatpush1.bf16.msra.mxu0 %v3646_v54  ;;  %1803 = vmatpush1.bf16.msra.mxu1 %v3649_v55  ;;  %v3742_v54 = vld [vmem:[#allocation7 + $0x50] ss:$8 sps:$4 sm:$0xff]   ;;  %v3747_v55 = vld [vmem:[#allocation7 + $0x64] ss:$8 sps:$4 sm:$0xff]  }
 0x12d   :  { %1640 = vmatprep.subr.bf16.mxu0 %v3654_v56  ;;  %1804 = vmatprep.subr.bf16.mxu1 %v3657_v57  ;;  %v3745_v56 = vld [vmem:[#allocation7 + $0x60] ss:$8 sps:$4 sm:$0xff]   ;;  %v3750_v57 = vld [vmem:[#allocation7 + $0x74] ss:$8 sps:$4 sm:$0xff]  }
 0x130   :  { %1641 = vmatpush1.bf16.msra.mxu0 %v3652_v58  ;;  %1805 = vmatpush1.bf16.msra.mxu1 %v3655_v59  ;;  %v3748_v58 = vld [vmem:[#allocation7 + $0x70] ss:$8 sps:$4 sm:$0xff]   ;;  %v3753_v59 = vld [vmem:[#allocation7 + $0x84] ss:$8 sps:$4 sm:$0xff]  }
 0x131   :  { %1642 = vmatprep.subr.bf16.mxu0 %v3660_v60  ;;  %1806 = vmatprep.subr.bf16.mxu1 %v3663_v61  ;;  %v3751_v60 = vld [vmem:[#allocation7 + $0x80] ss:$8 sps:$4 sm:$0xff]   ;;  %v3756_v61 = vld [vmem:[#allocation7 + $0x94] ss:$8 sps:$4 sm:$0xff]  }
 0x134   :  { %1643 = vmatpush1.bf16.msra.mxu0 %v3658_v62  ;;  %1807 = vmatpush1.bf16.msra.mxu1 %v3661_v63  ;;  %v3754_v62 = vld [vmem:[#allocation7 + $0x90] ss:$8 sps:$4 sm:$0xff]   ;;  %v3759_v63 = vld [vmem:[#allocation7 + $0xa4] ss:$8 sps:$4 sm:$0xff]  }
 0x135   :  { %1644 = vmatprep.subr.bf16.mxu0 %v3666_v0  ;;  %1808 = vmatprep.subr.bf16.mxu1 %v3669_v1  ;;  %v3757_v0 = vld [vmem:[#allocation7 + $0xa0] ss:$8 sps:$4 sm:$0xff]   ;;  %v3762_v1 = vld [vmem:[#allocation7 + $0xb4] ss:$8 sps:$4 sm:$0xff]  }
 0x138   :  { %1645 = vmatpush1.bf16.msra.mxu0 %v3664_v2  ;;  %1809 = vmatpush1.bf16.msra.mxu1 %v3667_v3  ;;  %v3760_v2 = vld [vmem:[#allocation7 + $0xb0] ss:$8 sps:$4 sm:$0xff]   ;;  %v3765_v3 = vld [vmem:[#allocation7 + $0xc4] ss:$8 sps:$4 sm:$0xff]  }
 0x139   :  { %1646 = vmatprep.subr.bf16.mxu0 %v3672_v4  ;;  %1810 = vmatprep.subr.bf16.mxu1 %v3675_v5  ;;  %v3763_v4 = vld [vmem:[#allocation7 + $0xc0] ss:$8 sps:$4 sm:$0xff]   ;;  %v3768_v5 = vld [vmem:[#allocation7 + $0xd4] ss:$8 sps:$4 sm:$0xff]  }
 0x13c   :  { %1647 = vmatpush1.bf16.msra.mxu0 %v3670_v6  ;;  %1811 = vmatpush1.bf16.msra.mxu1 %v3673_v7  ;;  %v3766_v6 = vld [vmem:[#allocation7 + $0xd0] ss:$8 sps:$4 sm:$0xff]   ;;  %v3771_v7 = vld [vmem:[#allocation7 + $0xe4] ss:$8 sps:$4 sm:$0xff]  }
 0x13d   :  { %1657 = vmatprep.subr.bf16.mxu0 %v3680_v8  ;;  %1821 = vmatprep.subr.bf16.mxu1 %v3683_v9  ;;  %v3769_v8 = vld [vmem:[#allocation7 + $0xe0] ss:$8 sps:$4 sm:$0xff]   ;;  %v3774_v9 = vld [vmem:[#allocation7 + $0xf4] ss:$8 sps:$4 sm:$0xff]  }
 0x13f   :  { %1649 = vmatmul.mubr.bf16.vlgmr.msra.gmra.mrb[0].mxu0 %v2889_v13  ;;  %1813 = vmatmul.mubr.bf16.vlgmr.msra.gmra.mrb[0].mxu1 %v2889_v13  ;;  %v3823_v13 = vld [vmem:[#allocation8 + $0x40] sm:$0xff]  }
 0x140   :  { %1658 = vmatpush1.bf16.msra.mxu0 %v3678_v10  ;;  %1822 = vmatpush1.bf16.msra.mxu1 %v3681_v12  ;;  %v3772_v10 = vld [vmem:[#allocation7 + $0xf0] ss:$8 sps:$4 sm:$0xff]   ;;  %v3777_v12 = vld [vmem:[#allocation7 + $0x104] ss:$8 sps:$4 sm:$0xff]  }
 0x141   :  { %1659 = vmatprep.subr.bf16.mxu0 %v3686_v14  ;;  %1823 = vmatprep.subr.bf16.mxu1 %v3689_v15  ;;  %v3824_v14 = vld [vmem:[#allocation8] sm:$0xff]   ;;  %v3825_v15 = vld [vmem:[#allocation8 + $0x48] sm:$0xff]  }
 0x142   :  { %1689 = vmatprep.mubr.bf16.mxu0 %v4062_v22  ;;  %1853 = vmatprep.mubr.bf16.mxu1 %v4062_v22  ;;  %v3832_v22 = vld [vmem:[#allocation8 + $0x20] sm:$0xff]  }
 0x144   :  { %1660 = vmatpush1.bf16.msra.mxu0 %v3684_v16  ;;  %1824 = vmatpush1.bf16.msra.mxu1 %v3687_v17  ;;  %v3826_v16 = vld [vmem:[#allocation8 + $0x8] sm:$0xff]   ;;  %v3827_v17 = vld [vmem:[#allocation8 + $0x50] sm:$0xff]  }
 0x145   :  { %1661 = vmatprep.subr.bf16.mxu0 %v3692_v18  ;;  %1825 = vmatprep.subr.bf16.mxu1 %v3695_v19  ;;  %v3828_v18 = vld [vmem:[#allocation8 + $0x10] sm:$0xff]   ;;  %v3829_v19 = vld [vmem:[#allocation8 + $0x58] sm:$0xff]  }
 0x148   :  { %1662 = vmatpush1.bf16.msra.mxu0 %v3690_v20  ;;  %1826 = vmatpush1.bf16.msra.mxu1 %v3693_v21  ;;  %v3830_v20 = vld [vmem:[#allocation8 + $0x18] sm:$0xff]   ;;  %v3831_v21 = vld [vmem:[#allocation8 + $0x60] sm:$0xff]  }
 0x149   :  { %1663 = vmatprep.subr.bf16.mxu0 %v3698_v11  ;;  %1827 = vmatprep.subr.bf16.mxu1 %v3701_v23  ;;  %v3833_v11 = vld [vmem:[#allocation8 + $0x68] sm:$0xff]  }
 0x14a   :  { %v3834_v23 = vld [vmem:[#allocation8 + $0x28] sm:$0xff]  }
 0x14c   :  { %1664 = vmatpush1.bf16.msra.mxu0 %v3696_v24  ;;  %1828 = vmatpush1.bf16.msra.mxu1 %v3699_v25  ;;  %v369_v24 = vlaneseq }
 0x14d   :  { %1665 = vmatprep.subr.bf16.mxu0 %v3704_v26  ;;  %1829 = vmatprep.subr.bf16.mxu1 %v3707_v27  ;;  %v4250_v27 = vld [vmem:[%s4329_s2] sm:$0xf] }
 0x14e   :  { %v4244_v25 = vshrl.u32 %v369_v24, 7  ;;  %v3837_v24 = vld [vmem:[#allocation8 + $0x78] sm:$0xff]  }
 0x150   :  { %1666 = vmatpush1.bf16.msra.mxu0 %v3702_v28  ;;  %1830 = vmatpush1.bf16.msra.mxu1 %v3705_v29  ;;  %v371_v26 = vsub.s32 0, %v4244_v25  ;;  %v375_v28 = vsub.s32 1, %v4244_v25  ;;  %v383_v29 = vsub.s32 3, %v4244_v25 }
 0x151   :  { %1667 = vmatprep.subr.bf16.mxu0 %v3710_v30  ;;  %1831 = vmatprep.subr.bf16.mxu1 %v3713_v31 }
 0x152   :  { %v372_v30 = vrot.slane %v4250_v27, %v371_v26  ;;  %v376_v31 = vrot.slane %v4250_v27, %v375_v28 }
 0x154   :  { %1668 = vmatpush1.bf16.msra.mxu0 %v3708_v32  ;;  %1832 = vmatpush1.bf16.msra.mxu1 %v3711_v33  ;;  %v384_v32 = vrot.slane %v4250_v27, %v383_v29  ;;  %v4063_v29 = vmov 0.0  }
 0x155   :  { %1669 = vmatprep.subr.bf16.mxu0 %v3716_v34  ;;  %1833 = vmatprep.subr.bf16.mxu1 %v3719_v35 }
 0x158   :  { %1670 = vmatpush1.bf16.msra.mxu0 %v3714_v36  ;;  %1834 = vmatpush1.bf16.msra.mxu1 %v3717_v37 }
 0x159   :  { %1671 = vmatprep.subr.bf16.mxu0 %v3722_v38  ;;  %1835 = vmatprep.subr.bf16.mxu1 %v3725_v39 }
 0x15c   :  { %1672 = vmatpush1.bf16.msra.mxu0 %v3720_v40  ;;  %1836 = vmatpush1.bf16.msra.mxu1 %v3723_v41 }
 0x15d   :  { %2266 = vmatprep.subr.bf16.mxu0 %v3729_v42  ;;  %3224 = vmatprep.subr.bf16.mxu1 %v3823_v13  ;;  %v3816_v13 = vld [vmem:[#allocation7 + $0x1d4] ss:$8 sps:$4 sm:$0xff]  }
 0x15f   :  { %1690 = vmatmul.mubr.bf16.vlgmr.msra.gmra.mrb[0].mxu0 %v3726_v43  ;;  %1854 = vmatmul.mubr.bf16.vlgmr.msra.gmra.mrb[0].mxu1 %v3726_v43 }
 0x160   :  { %2267 = vmatpush1.bf16.msra.mxu0 %v3727_v44  ;;  %3225 = vmatpush3.bf16.msra.mxu1 %v3824_v14  ;;  %v3814_v14 = vld [vmem:[#allocation7 + $0x1d0] ss:$8 sps:$4 sm:$0xff]  }
 0x161   :  { %2268 = vmatprep.subr.bf16.mxu0 %v3732_v45  ;;  %3226 = vmatprep.subr.bf16.mxu1 %v3825_v15 }
 0x164   :  { %2269 = vmatpush1.bf16.msra.mxu0 %v3730_v46  ;;  %3227 = vmatpush3.bf16.msra.mxu1 %v3826_v16  ;;  %v3819_v16 = vld [vmem:[#allocation7 + $0x1e4] ss:$8 sps:$4 sm:$0xff]  }
 0x165   :  { %2270 = vmatprep.subr.bf16.mxu0 %v3735_v47  ;;  %3228 = vmatprep.subr.bf16.mxu1 %v3827_v17  ;;  %v3817_v17 = vld [vmem:[#allocation7 + $0x1e0] ss:$8 sps:$4 sm:$0xff]  }
 0x168   :  { %2271 = vmatpush1.bf16.msra.mxu0 %v3733_v48  ;;  %3229 = vmatpush3.bf16.msra.mxu1 %v3828_v18  ;;  %v3775_v48 = vld [vmem:[#allocation7 + $0x100] ss:$8 sps:$4 sm:$0xff]  }
 0x169   :  { %2272 = vmatprep.subr.bf16.mxu0 %v3738_v49  ;;  %3230 = vmatprep.subr.bf16.mxu1 %v3829_v19  ;;  %v3822_v19 = vld [vmem:[#allocation7 + $0x1f4] ss:$8 sps:$4 sm:$0xff]  }
 0x16c   :  { %2273 = vmatpush1.bf16.msra.mxu0 %v3736_v50  ;;  %3231 = vmatpush3.bf16.msra.mxu1 %v3830_v20  ;;  %v3780_v50 = vld [vmem:[#allocation7 + $0x114] ss:$8 sps:$4 sm:$0xff]   ;;  %v3820_v20 = vld [vmem:[#allocation7 + $0x1f0] ss:$8 sps:$4 sm:$0xff]  }
 0x16d   :  { %2274 = vmatprep.subr.bf16.mxu0 %v3741_v51  ;;  %3232 = vmatprep.subr.bf16.mxu1 %v3831_v21 }
 0x170   :  { %2275 = vmatpush1.bf16.msra.mxu0 %v3739_v52  ;;  %3233 = vmatpush3.bf16.msra.mxu1 %v3832_v22  ;;  %v3778_v52 = vld [vmem:[#allocation7 + $0x110] ss:$8 sps:$4 sm:$0xff]  }
 0x171   :  { %2276 = vmatprep.subr.bf16.mxu0 %v3744_v53  ;;  %3234 = vmatprep.subr.bf16.mxu1 %v3833_v11  ;;  %v3783_v53 = vld [vmem:[#allocation7 + $0x124] ss:$8 sps:$4 sm:$0xff]   ;;  %v3835_v11 = vld [vmem:[#allocation8 + $0x70] sm:$0xff]  }
 0x174   :  { %2277 = vmatpush1.bf16.msra.mxu0 %v3742_v54  ;;  %3235 = vmatpush3.bf16.msra.mxu1 %v3834_v23  ;;  %v3781_v54 = vld [vmem:[#allocation7 + $0x120] ss:$8 sps:$4 sm:$0xff]   ;;  %v3836_v23 = vld [vmem:[#allocation8 + $0x30] sm:$0xff]  }
 0x175   :  { %2278 = vmatprep.subr.bf16.mxu0 %v3747_v55  ;;  %v3786_v55 = vld [vmem:[#allocation7 + $0x134] ss:$8 sps:$4 sm:$0xff]   ;;  %3236 = vmatprep.subr.bf16.mxu1 %v3835_v11 }
 0x178   :  { %2279 = vmatpush1.bf16.msra.mxu0 %v3745_v56  ;;  %v3784_v56 = vld [vmem:[#allocation7 + $0x130] ss:$8 sps:$4 sm:$0xff]   ;;  %3237 = vmatpush3.bf16.msra.mxu1 %v3836_v23 }
 0x179   :  { %2280 = vmatprep.subr.bf16.mxu0 %v3750_v57  ;;  %v3789_v57 = vld [vmem:[#allocation7 + $0x144] ss:$8 sps:$4 sm:$0xff]   ;;  %3238 = vmatprep.subr.bf16.mxu1 %v3837_v24 }
 0x17c   :  { %2281 = vmatpush1.bf16.msra.mxu0 %v3748_v58  ;;  %v3787_v58 = vld [vmem:[#allocation7 + $0x140] ss:$8 sps:$4 sm:$0xff]  }
 0x17d   :  { %2282 = vmatprep.subr.bf16.mxu0 %v3753_v59  ;;  %v3792_v59 = vld [vmem:[#allocation7 + $0x154] ss:$8 sps:$4 sm:$0xff]  }
 0x180   :  { %2283 = vmatpush1.bf16.msra.mxu0 %v3751_v60  ;;  %v3790_v60 = vld [vmem:[#allocation7 + $0x150] ss:$8 sps:$4 sm:$0xff]  }
 0x181   :  { %2284 = vmatprep.subr.bf16.mxu0 %v3756_v61  ;;  %v3795_v61 = vld [vmem:[#allocation7 + $0x164] ss:$8 sps:$4 sm:$0xff]  }
 0x184   :  { %2285 = vmatpush1.bf16.msra.mxu0 %v3754_v62  ;;  %v3793_v62 = vld [vmem:[#allocation7 + $0x160] ss:$8 sps:$4 sm:$0xff]  }
 0x185   :  { %2286 = vmatprep.subr.bf16.mxu0 %v3759_v63  ;;  %v3798_v63 = vld [vmem:[#allocation7 + $0x174] ss:$8 sps:$4 sm:$0xff]  }
 0x188   :  { %2287 = vmatpush1.bf16.msra.mxu0 %v3757_v0  ;;  %v3796_v0 = vld [vmem:[#allocation7 + $0x170] ss:$8 sps:$4 sm:$0xff]  }
 0x189   :  { %2288 = vmatprep.subr.bf16.mxu0 %v3762_v1  ;;  %v3801_v1 = vld [vmem:[#allocation7 + $0x184] ss:$8 sps:$4 sm:$0xff]  }
 0x18c   :  { %2289 = vmatpush1.bf16.msra.mxu0 %v3760_v2  ;;  %v3799_v2 = vld [vmem:[#allocation7 + $0x180] ss:$8 sps:$4 sm:$0xff]  }
 0x18d   :  { %2290 = vmatprep.subr.bf16.mxu0 %v3765_v3  ;;  %v3804_v3 = vld [vmem:[#allocation7 + $0x194] ss:$8 sps:$4 sm:$0xff]  }
 0x190   :  { %2291 = vmatpush1.bf16.msra.mxu0 %v3763_v4  ;;  %v3802_v4 = vld [vmem:[#allocation7 + $0x190] ss:$8 sps:$4 sm:$0xff]  }
 0x191   :  { %2292 = vmatprep.subr.bf16.mxu0 %v3768_v5  ;;  %v3807_v5 = vld [vmem:[#allocation7 + $0x1a4] ss:$8 sps:$4 sm:$0xff]  }
 0x194   :  { %2293 = vmatpush1.bf16.msra.mxu0 %v3766_v6  ;;  %v3805_v6 = vld [vmem:[#allocation7 + $0x1a0] ss:$8 sps:$4 sm:$0xff]  }
 0x195   :  { %2294 = vmatprep.subr.bf16.mxu0 %v3771_v7  ;;  %v3810_v7 = vld [vmem:[#allocation7 + $0x1b4] ss:$8 sps:$4 sm:$0xff]  }
 0x198   :  { %2295 = vmatpush1.bf16.msra.mxu0 %v3769_v8  ;;  %v3808_v8 = vld [vmem:[#allocation7 + $0x1b0] ss:$8 sps:$4 sm:$0xff]  }
 0x199   :  { %2296 = vmatprep.subr.bf16.mxu0 %v3774_v9  ;;  %v3813_v9 = vld [vmem:[#allocation7 + $0x1c4] ss:$8 sps:$4 sm:$0xff]  }
 0x19c   :  { %2297 = vmatpush1.bf16.msra.mxu0 %v3772_v10  ;;  %v3811_v10 = vld [vmem:[#allocation7 + $0x1c0] ss:$8 sps:$4 sm:$0xff]  }
 0x19d   :  { %2307 = vmatprep.subr.bf16.mxu0 %v3777_v12  ;;  %v379_v12 = vsub.s32 2, %v4244_v25  ;;  %v3841_v25 = vld [vmem:[#allocation10 + $0x10] sm:$0xff]  }
 0x19f   :  { %v380_v15 = vrot.slane %v4250_v27, %v379_v12  ;;  %v3838_v27 = vld [vmem:[#allocation8 + $0x38] sm:$0xff]   ;;  %v3857_v12 = vld [vmem:[#allocation13 + $0x10] sm:$0xff]  }
 0x1a0   :  { %3239 = vmatpush3.bf16.msra.mxu1 %v3838_v27  ;;  %v3215_v27 = vld [vmem:[%s4339_s12] ss:$0 sm:$0xff] }
 0x1a1   :  { %3273 = vmatprep.subr.bf16.mxu1 %v4063_v29 }
 0x232   :  { %v1691_v33 = vpop.f32.mrb[0].mxu0  ;;  %v4261_v34 = vpop.f32.mrb[0].mxu1 }
 0x233   :  { %v3333_v35 = vadd.f32 %v1691_v33, %v372_v30  ;;  %v1693_v36 = vpop.f32.mrb[1].mxu0  ;;  %v1857_v37 = vpop.f32.mrb[1].mxu1  ;;  %v3335_v18 = vadd.f32 %v4261_v34, %v380_v15  ;;  %v1934_v30 = vld [vmem:[%s4331_s4] sm:$0x3]  ;;  %v3860_v15 = vld [vmem:[#allocation13 + $0x28] sm:$0xff]  }
 0x234   :  { %v3334_v38 = vadd.f32 %v1693_v36, %v376_v31  ;;  %v3336_v39 = vadd.f32 %v1857_v37, %v384_v32  ;;  %v1695_v40 = vpop.f32.mrb[2].mxu0  ;;  %v1859_v41 = vpop.f32.mrb[2].mxu1  ;;  %v1939_v31 = vrot.slane %v1934_v30, %v371_v26  ;;  %v1943_v32 = vrot.slane %v1934_v30, %v375_v28  ;;  %v3842_v26 = vld [vmem:[#allocation10 + $0x18] sm:$0xff]   ;;  %v3843_v28 = vld [vmem:[#allocation10 + $0x20] sm:$0xff]  }
 0x235   :  { %v1862_v42 = vmax.f32 %v3333_v35, 0.0  ;;  %v1696_v43 = vpop.f32.mrb[3].mxu0  ;;  %v1860_v44 = vpop.f32.mrb[3].mxu1  ;;  %v1864_v21 = vmax.f32 %v3335_v18, 0.0  ;;  %v3206_v18 = vld [vmem:[%s4337_s10] ss:$0 sm:$0xff] }
 0x236   :  { %v1863_v45 = vmax.f32 %v3334_v38, 0.0  ;;  %v1865_v46 = vmax.f32 %v3336_v39, 0.0  ;;  %v3840_v44 = vld [vmem:[#allocation10 + $0x8] sm:$0xff]   ;;  %s4017_s10 = scalar_lea.vmem %s2874_s23, 128 }
 0x237   :  { %v1866_v49 = vpack.c.bf16 %v1862_v42, %v1862_v42  ;;  %v1868_v22 = vpack.c.bf16 %v1864_v21, %v1864_v21  ;;  %v3839_v42 = vld [vmem:[#allocation10] sm:$0xff]   ;;  %p4018_p0 = scmp.ne.s32.totalorder %s2874_s23, %s4017_s10  ;;  %p4023_p2 = scmp.lt.s32.totalorder %s4017_s10, %s4017_s10 }
 0x238   :  { %v1867_v47 = vpack.c.bf16 %v1863_v45, %v1863_v45  ;;  %v1869_v51 = vpack.c.bf16 %v1865_v46, %v1865_v46  ;;  %v3844_v45 = vld [vmem:[#allocation10 + $0x28] sm:$0xff]   ;;  %v3845_v46 = vld [vmem:[#allocation10 + $0x30] sm:$0xff]  }
 0x239   :  { %p4024_p3 = por %p4023_p2, %p4022_p1 }
 0x23a   :  { %2298 = vmatprep.mubr.bf16.mxu0 %v1867_v47  ;;  %v3846_v47 = vld [vmem:[#allocation10 + $0x38] sm:$0xff]  }
 0x23b   :  { %2299 = vmatmul.mubr.bf16.vlgmr.msra.gmra.mrb[4].mxu0 %v1866_v49  ;;  %v3180_v49 = vld [vmem:[%s4333_s6] ss:$0 sm:$0xff]  ;;  %p4025_p4 = pnand %p4024_p3, %p4018_p0 }
 0x23c   :  { %2308 = vmatpush1.bf16.msra.mxu0 %v3775_v48  ;;  %2339 = vmatprep.mubr.bf16.mxu0 %v1869_v51 }
 0x23d   :  { %2309 = vmatprep.subr.bf16.mxu0 %v3780_v50 }
 0x240   :  { %2310 = vmatpush1.bf16.msra.mxu0 %v3778_v52 }
 0x241   :  { %2311 = vmatprep.subr.bf16.mxu0 %v3783_v53 }
 0x244   :  { %2312 = vmatpush1.bf16.msra.mxu0 %v3781_v54 }
 0x245   :  { %2313 = vmatprep.subr.bf16.mxu0 %v3786_v55 }
 0x248   :  { %2314 = vmatpush1.bf16.msra.mxu0 %v3784_v56  ;;  %v3847_v56 = vld [vmem:[#allocation11] sm:$0xff]  }
 0x249   :  { %2315 = vmatprep.subr.bf16.mxu0 %v3789_v57 }
 0x24c   :  { %2316 = vmatpush1.bf16.msra.mxu0 %v3787_v58  ;;  %v3848_v58 = vld [vmem:[#allocation11 + $0x8] sm:$0xff]  }
 0x24d   :  { %2317 = vmatprep.subr.bf16.mxu0 %v3792_v59  ;;  %v3849_v59 = vld [vmem:[#allocation11 + $0x10] sm:$0xff]  }
 0x250   :  { %2318 = vmatpush1.bf16.msra.mxu0 %v3790_v60  ;;  %v3850_v60 = vld [vmem:[#allocation11 + $0x18] sm:$0xff]  }
 0x251   :  { %2319 = vmatprep.subr.bf16.mxu0 %v3795_v61  ;;  %v3851_v61 = vld [vmem:[#allocation11 + $0x20] sm:$0xff]  }
 0x254   :  { %2320 = vmatpush1.bf16.msra.mxu0 %v3793_v62  ;;  %v3852_v62 = vld [vmem:[#allocation11 + $0x28] sm:$0xff]  }
 0x255   :  { %2321 = vmatprep.subr.bf16.mxu0 %v3798_v63  ;;  %v3853_v63 = vld [vmem:[#allocation11 + $0x30] sm:$0xff]  }
 0x258   :  { %2322 = vmatpush1.bf16.msra.mxu0 %v3796_v0  ;;  %v3854_v0 = vld [vmem:[#allocation11 + $0x38] sm:$0xff]  }
 0x259   :  { %2323 = vmatprep.subr.bf16.mxu0 %v3801_v1  ;;  %v3197_v1 = vld [vmem:[%s4335_s8] ss:$0 sm:$0xff] }
 0x25c   :  { %2324 = vmatpush1.bf16.msra.mxu0 %v3799_v2 }
 0x25d   :  { %2325 = vmatprep.subr.bf16.mxu0 %v3804_v3 }
 0x260   :  { %2326 = vmatpush1.bf16.msra.mxu0 %v3802_v4 }
 0x261   :  { %2327 = vmatprep.subr.bf16.mxu0 %v3807_v5 }
 0x264   :  { %2328 = vmatpush1.bf16.msra.mxu0 %v3805_v6 }
 0x265   :  { %2329 = vmatprep.subr.bf16.mxu0 %v3810_v7 }
 0x268   :  { %2330 = vmatpush1.bf16.msra.mxu0 %v3808_v8  ;;  %v3855_v8 = vld [vmem:[#allocation13] sm:$0xff]  }
 0x269   :  { %2331 = vmatprep.subr.bf16.mxu0 %v3813_v9 }
 0x26c   :  { %2332 = vmatpush1.bf16.msra.mxu0 %v3811_v10  ;;  %v3856_v10 = vld [vmem:[#allocation13 + $0x8] sm:$0xff]  }
 0x26d   :  { %2333 = vmatprep.subr.bf16.mxu0 %v3816_v13  ;;  %v3858_v13 = vld [vmem:[#allocation13 + $0x18] sm:$0xff]  }
 0x270   :  { %2334 = vmatpush1.bf16.msra.mxu0 %v3814_v14  ;;  %v3859_v14 = vld [vmem:[#allocation13 + $0x20] sm:$0xff]  }
 0x271   :  { %2335 = vmatprep.subr.bf16.mxu0 %v3819_v16  ;;  %v3861_v16 = vld [vmem:[#allocation13 + $0x30] sm:$0xff]  }
 0x274   :  { %2336 = vmatpush1.bf16.msra.mxu0 %v3817_v17  ;;  %v3862_v17 = vld [vmem:[#allocation13 + $0x38] sm:$0xff]  }
 0x275   :  { %2337 = vmatprep.subr.bf16.mxu0 %v3822_v19 }
 0x278   :  { %2338 = vmatpush1.bf16.msra.mxu0 %v3820_v20 }
 0x27b   :  { %2340 = vmatmul.mubr.bf16.vlgmr.msra.gmra.mrb[4].mxu0 %v1868_v22 }
 0x34e   :  { %v2341_v33 = vpop.f32.mrb[4].mxu0 }
 0x34f   :  { %v3337_v34 = vadd.f32 %v2341_v33, %v1939_v31  ;;  %v2343_v35 = vpop.f32.mrb[5].mxu0 }
 0x350   :  { %v3338_v36 = vadd.f32 %v2343_v35, %v1943_v32  ;;  %v2345_v37 = vpop.f32.mrb[6].mxu0 }
 0x351   :  { %v2348_v38 = vmax.f32 %v3337_v34, 0.0  ;;  %v2346_v39 = vpop.f32.mrb[7].mxu0 }
 0x352   :  { %v2349_v40 = vmax.f32 %v3338_v36, 0.0 }
 0x353   :  { %v2350_v43 = vpack.c.bf16 %v2348_v38, %v2348_v38 }
 0x354   :  { %v2351_v41 = vpack.c.bf16 %v2349_v40, %v2349_v40 }
 0x356   :  { %2519 = vmatprep.mubr.bf16.mxu1 %v2351_v41 }
 0x357   :  { %2520 = vmatmul.mubr.bf16.vlgmr.msra.gmra.mrb[4].mxu1 %v2350_v43 }
 0x358   :  { %3274 = vmatpush3.bf16.msra.mxu1 %v3839_v42  ;;  %3289 = vmatprep.mubr.msk.bf16.mxu1 %vm4064_vm0, %v4063_v29 }
 0x359   :  { %3275 = vmatprep.subr.bf16.mxu1 %v4063_v29 }
 0x35c   :  { %3276 = vmatpush3.bf16.msra.mxu1 %v3840_v44 }
 0x35d   :  { %3277 = vmatprep.subr.bf16.mxu1 %v4063_v29 }
 0x360   :  { %3278 = vmatpush3.bf16.msra.mxu1 %v3841_v25 }
 0x361   :  { %3279 = vmatprep.subr.bf16.mxu1 %v4063_v29 }
 0x364   :  { %3280 = vmatpush3.bf16.msra.mxu1 %v3842_v26 }
 0x365   :  { %3281 = vmatprep.subr.bf16.mxu1 %v4063_v29 }
 0x368   :  { %3282 = vmatpush3.bf16.msra.mxu1 %v3843_v28 }
 0x369   :  { %3283 = vmatprep.subr.bf16.mxu1 %v4063_v29 }
 0x36c   :  { %3284 = vmatpush3.bf16.msra.mxu1 %v3844_v45 }
 0x36d   :  { %3285 = vmatprep.subr.bf16.mxu1 %v4063_v29 }
 0x370   :  { %3286 = vmatpush3.bf16.msra.mxu1 %v3845_v46 }
 0x371   :  { %3287 = vmatprep.subr.bf16.mxu1 %v4063_v29 }
 0x374   :  { %3288 = vmatpush3.bf16.msra.mxu1 %v3846_v47 }
 0x375   :  { %3293 = vmatprep.subr.bf16.mxu1 %v4063_v29 }
 0x42a   :  { %v3240_v48 = vpop.f32.mrb[4].mxu1 }
 0x42b   :  { %v3241_v50 = vpop.f32.mrb[5].mxu1 }
 0x42c   :  { %v3242_v51 = vadd.f32 %v3241_v50, %v3240_v48  ;;  %v3243_v52 = vpop.f32.mrb[6].mxu1 }
 0x42d   :  { %v3244_v53 = vpop.f32.mrb[7].mxu1 }
 0x42e   :  { %v2522_v54 = vadd.f32 %v3242_v51, %v3180_v49 }
 0x430   :  { %v2527_v55 = vmax.f32 %v2522_v54, 0.0 }
 0x432   :  { %v2528_v57 = vpack.c.bf16 %v2527_v55, %v2527_v55 }
 0x434   :  { %3290 = vmatmul.mubr.bf16.vlgmr.msra.gmra.mrb[8].mxu1 %v2528_v57 }
 0x435   :  { %3294 = vmatpush3.bf16.msra.mxu1 %v3847_v56  ;;  %3309 = vmatprep.mubr.msk.bf16.mxu1 %vm4064_vm0, %v4063_v29 }
 0x436   :  { %3295 = vmatprep.subr.bf16.mxu1 %v4063_v29 }
 0x439   :  { %3296 = vmatpush3.bf16.msra.mxu1 %v3848_v58 }
 0x43a   :  { %3297 = vmatprep.subr.bf16.mxu1 %v4063_v29 }
 0x43d   :  { %3298 = vmatpush3.bf16.msra.mxu1 %v3849_v59 }
 0x43e   :  { %3299 = vmatprep.subr.bf16.mxu1 %v4063_v29 }
 0x441   :  { %3300 = vmatpush3.bf16.msra.mxu1 %v3850_v60 }
 0x442   :  { %3301 = vmatprep.subr.bf16.mxu1 %v4063_v29 }
 0x445   :  { %3302 = vmatpush3.bf16.msra.mxu1 %v3851_v61 }
 0x446   :  { %3303 = vmatprep.subr.bf16.mxu1 %v4063_v29 }
 0x449   :  { %3304 = vmatpush3.bf16.msra.mxu1 %v3852_v62 }
 0x44a   :  { %3305 = vmatprep.subr.bf16.mxu1 %v4063_v29 }
 0x44d   :  { %3306 = vmatpush3.bf16.msra.mxu1 %v3853_v63 }
 0x44e   :  { %3307 = vmatprep.subr.bf16.mxu1 %v4063_v29 }
 0x451   :  { %3308 = vmatpush3.bf16.msra.mxu1 %v3854_v0 }
 0x452   :  { %3313 = vmatprep.subr.bf16.mxu1 %v4063_v29 }
 0x507   :  { %v2634_v2 = vpop.f32.mrb[8].mxu1 }
 0x508   :  { %v2635_v3 = vadd.f32 %v3197_v1, %v2634_v2  ;;  %v3291_v4 = vpop.f32.mrb[9].mxu1 }
 0x509   :  { %v2637_v5 = vpop.f32.mrb[10].mxu1 }
 0x50a   :  { %v2640_v6 = vmax.f32 %v2635_v3, 0.0  ;;  %v3292_v7 = vpop.f32.mrb[11].mxu1 }
 0x50c   :  { %v2641_v9 = vpack.c.bf16 %v2640_v6, %v2640_v6 }
 0x50e   :  { %3310 = vmatmul.mubr.bf16.vlgmr.msra.gmra.mrb[12].mxu1 %v2641_v9 }
 0x50f   :  { %3314 = vmatpush3.bf16.msra.mxu1 %v3855_v8  ;;  %3329 = vmatprep.mubr.msk.bf16.mxu1 %vm4064_vm0, %v4063_v29 }
 0x510   :  { %3315 = vmatprep.subr.bf16.mxu1 %v4063_v29 }
 0x513   :  { %3316 = vmatpush3.bf16.msra.mxu1 %v3856_v10 }
 0x514   :  { %3317 = vmatprep.subr.bf16.mxu1 %v4063_v29 }
 0x517   :  { %3318 = vmatpush3.bf16.msra.mxu1 %v3857_v12 }
 0x518   :  { %3319 = vmatprep.subr.bf16.mxu1 %v4063_v29 }
 0x51b   :  { %3320 = vmatpush3.bf16.msra.mxu1 %v3858_v13 }
 0x51c   :  { %3321 = vmatprep.subr.bf16.mxu1 %v4063_v29 }
 0x51f   :  { %3322 = vmatpush3.bf16.msra.mxu1 %v3859_v14 }
 0x520   :  { %3323 = vmatprep.subr.bf16.mxu1 %v4063_v29 }
 0x523   :  { %3324 = vmatpush3.bf16.msra.mxu1 %v3860_v15 }
 0x524   :  { %3325 = vmatprep.subr.bf16.mxu1 %v4063_v29 }
 0x527   :  { %3326 = vmatpush3.bf16.msra.mxu1 %v3861_v16 }
 0x528   :  { %3327 = vmatprep.subr.bf16.mxu1 %v4063_v29 }
 0x52b   :  { %3328 = vmatpush3.bf16.msra.mxu1 %v3862_v17 }
 0x5e1   :  { %v2747_v19 = vpop.f32.mrb[12].mxu1 }
 0x5e2   :  { %v2748_v20 = vadd.f32 %v3206_v18, %v2747_v19  ;;  %v3311_v21 = vpop.f32.mrb[13].mxu1 }
 0x5e3   :  { %v2750_v22 = vpop.f32.mrb[14].mxu1 }
 0x5e4   :  { %v2753_v11 = vmax.f32 %v2748_v20, 0.0  ;;  %v3312_v23 = vpop.f32.mrb[15].mxu1 }
 0x5e6   :  { %v2754_v24 = vpack.c.bf16 %v2753_v11, %v2753_v11 }
 0x5e8   :  { %3330 = vmatmul.mubr.bf16.vlgmr.msra.gmra.mrb[16].mxu1 %v2754_v24 }
 0x6bb   :  { %v2860_v29 = vpop.f32.mrb[16].mxu1 }
 0x6bc   :  { %v2861_v30 = vadd.f32 %v3215_v27, %v2860_v29  ;;  %v3331_v31 = vpop.f32.mrb[17].mxu1 }
 0x6bd   :  { %v2863_v32 = vpop.f32.mrb[18].mxu1 }
 0x6be   :  { %2866 = vst [vmem:[#allocation14] sm:$0xff] %v2861_v30  ;;  %v3332_v33 = vpop.f32.mrb[19].mxu1 }
 0x6bf   :  { %4028 = shalt.err (!%p4025_p4)
}
 0x6c0   :  { %s4029_s12 = scalar_lea.hbm %s4340_s13, 128 }
 0x6c1   :  { %p4030_p5 = scmp.ne.s32.totalorder %s4340_s13, %s4029_s12  ;;  %p4033_p6 = scmp.lt.u32.totalorder %s4029_s12, %s4340_s13 }
 0x6c3   :  { %p4035_p7 = pnand %p4033_p6, %p4030_p5 }
 0x6c5   :  { %4038 = shalt.err (!%p4035_p7)
}
 0x6c6   :  { %2876 = dma.vmem_to_hbm [thread:$0]  %s2874_s23, 128, %s4340_s13, [#allocation4]  }
 0x6c7   :  { %4047 = dma.done.wait [#allocation4], 128  }
 0x6c8   :  { %4048 = vsyncadd [#allocation4], 4294967168 }
 0x6c9   :  { %2880 = vsyncpa [#allocation3], 1 }
 0x6ca   :  { %2881 = vsyncpa [#allocation6], 1 }
 0x6cb   :  { %2882 = vsyncpa [#allocation9], 1 }
 0x6cc   :  { %2883 = vsyncpa [#allocation12], 1 }
 0x6cd   :  { %2884 = vsyncpa [#allocation4], 1 }

</bundles_post_ra>
